<compile_context>
chip_gen: v6e
topology: v6e:2x2x1
jax: 0.10.0
libtpu: 0.0.40
codegen_flags: <defaults>
</compile_context>

<pallas_src>
import functools
import math

import jax
import jax.numpy as jnp
from jax.experimental import pallas as pl
from jax.experimental.pallas import tpu as pltpu

ALPHA = 0.25
GAMMA = 2.0                      # applied as (1 - p) * (1 - p): stays on the VPU
EPS = 1e-7
_LOG_EPS = math.log(EPS)         # clamp on log(p_t) == clamp on p_t (monotone)
_LOG_1M_EPS = math.log1p(-EPS)

# (num_classes, dtype) keys for which the in-kernel re-layout failed to lower;
# those calls use the host-side re-layout path instead.
_HOST_RELAYOUT = set()


def _focal_loss_kernel(loc_p_ref, loc_t_ref, cls_p_ref, tgt_ref, acc_ref, *,
                       n_anchors, tile, n_inner, relayout_in_kernel):
    """One grid step = `tile` anchors; accumulates [loc_sum, focal_sum, pos_cnt]."""
    c = pl.program_id(0)          # parallel (per-TensorCore) axis
    i = pl.program_id(1)          # arbitrary (reduction) axis
    r = tile // 128

    @pl.when(i == 0)
    def _():
        acc_ref[...] = jnp.zeros_like(acc_ref)

    # Unclamped global tile index.  (The index_maps clamp the DMA window into
    # bounds; the true index is kept here so duplicated / out-of-range tiles are
    # fully masked out.)
    t_blk = c * n_inner + i

    if relayout_in_kernel:
        # Natural (tile, k) blocks -> dense (r, k, 128): anchors on sublanes+lanes.
        def densify(v):
            k = v.shape[-1]
            return jnp.swapaxes(v.astype(jnp.float32).reshape(r, 128, k), 1, 2)
        lp = densify(loc_p_ref[...])                   # (r, 4, 128)
        lt = densify(loc_t_ref[...])                   # (r, 4, 128)
        x = densify(cls_p_ref[...])                    # (r, C, 128)
    else:
        lp = loc_p_ref[...].astype(jnp.float32)        # already (r, 4, 128)
        lt = loc_t_ref[...].astype(jnp.float32)
        x = cls_p_ref[...].astype(jnp.float32)         # already (r, C, 128)

    tgt = tgt_ref[0]                                   # (r, 128) int32

    # Validity mask for partial / duplicated tiles (no padding of the big inputs).
    row = jax.lax.broadcasted_iota(jnp.int32, (r, 128), 0)
    col = jax.lax.broadcasted_iota(jnp.int32, (r, 128), 1)
    valid = (row * 128 + col) < (n_anchors - t_blk * tile)
    pos = jnp.logical_and(tgt > 0, valid)              # positive anchors

    # --- SmoothL1 (sum over the 4 coords) on positive anchors ---
    d = lp - lt
    ad = jnp.abs(d)
    sl1 = jnp.where(ad < 1.0, 0.5 * d * d, ad - 0.5)   # (r, 4, 128)
    loc_row = jnp.sum(sl1, axis=1)                     # (r, 128)

    # --- Focal loss: log-softmax + one-hot gather over classes ---
    m = jnp.max(x, axis=1, keepdims=True)              # (r, 1, 128)
    z = x - m
    lse = jnp.log(jnp.sum(jnp.exp(z), axis=1))         # (r, 128)
    cls_idx = jax.lax.broadcasted_iota(jnp.int32, x.shape, 1)
    # one-hot over (num_classes+1) with column 0 dropped: label k>0 -> class k-1,
    # labels 0 (background) / -1 (ignore) match nothing -> zero contribution.
    onehot = (cls_idx + 1) == tgt[:, None, :]
    zt = jnp.sum(jnp.where(onehot, z, 0.0), axis=1)    # z at the target class
    logpt = jnp.clip(zt - lse, _LOG_EPS, _LOG_1M_EPS)  # == clamp(p_t, eps, 1-eps)
    pt = jnp.exp(logpt)
    one_m = 1.0 - pt
    fl_row = (-ALPHA) * logpt * one_m * one_m          # (r, 128)

    zero = jnp.zeros_like(loc_row)
    one = jnp.ones_like(loc_row)
    # Fused resident accumulator: rows = [smooth-l1 sum, focal sum, pos count].
    # (float32 count: exact up to ~16.7M positive anchors.)
    acc_ref[...] += jnp.stack([jnp.where(pos, loc_row, zero),
                               jnp.where(pos, fl_row, zero),
                               jnp.where(pos, one, zero)])


def focal_loss_pallas(loc_preds, loc_targets, cls_preds, cls_targets, *,
                      tile_anchors=16384, relayout="auto"):
    """loc_preds/loc_targets: [B, A, 4]; cls_preds: [B, A, C];
    cls_targets: [B, A] int with values in {-1, 0, 1..C}.

    relayout: "kernel" (in-kernel re-layout, no extra HBM pass), "host"
    (XLA pre-transpose), or "auto" (try "kernel", fall back to "host")."""
    B, A, _ = loc_preds.shape
    C = cls_preds.shape[-1]
    N = B * A
    assert N >= 1

    # Free (metadata-only) reshapes of the big streams - no HBM transpose / pad.
    loc_p = loc_preds.reshape(N, 4)
    loc_t = loc_targets.reshape(N, 4)
    cls_p = cls_preds.reshape(N, C)

    if N < 128:
        # Degenerate tiny problem: pad the anchor axis up to one lane group.
        pad = 128 - N
        loc_p = jnp.pad(loc_p, ((0, pad), (0, 0)))
        loc_t = jnp.pad(loc_t, ((0, pad), (0, 0)))
        cls_p = jnp.pad(cls_p, ((0, pad), (0, 0)))
        n_rows = 128
    else:
        n_rows = N

    # tile = anchors per grid step (sweep knob); big enough that the per-step DMA
    # dwarfs the ~0.35us fixed pipeline overhead.
    r = max(1, min(tile_anchors // 128, n_rows // 128))
    tile = r * 128
    n_tiles = pl.cdiv(n_rows, tile)
    cores = 2 if n_tiles >= 2 else 1      # v7x megacore split; no-op on 1-TC chips
    n_inner = pl.cdiv(n_tiles, cores)

    # Targets: tiny stream -> pad + reshape to the lane-dense (n_tiles, r, 128).
    # TODO(synk): upstream could hand targets in as int8/int16 to shrink this
    # stream further; int32 is kept here for simplicity.
    tgt = cls_targets.reshape(N).astype(jnp.int32)
    tgt = jnp.pad(tgt, (0, n_tiles * tile - N), constant_values=-1)
    tgt = tgt.reshape(n_tiles, r, 128)

    def tile_map(c, i):
        return (jnp.minimum(c * n_inner + i, n_tiles - 1), 0)

    def tile_map3(c, i):
        return (jnp.minimum(c * n_inner + i, n_tiles - 1), 0, 0)

    out_shape = jax.ShapeDtypeStruct((3 * cores, r, 128), jnp.float32)
    out_spec = pl.BlockSpec((3, r, 128), lambda c, i: (c, 0, 0))

    itemsize = max(jnp.dtype(loc_preds.dtype).itemsize,
                   jnp.dtype(cls_preds.dtype).itemsize)
    step_bytes = tile * ((C + 8) * itemsize + 4)
    # double-buffered inputs + f32 temporaries; keep below v7x's 64 MiB VMEM.
    vmem_limit = int(min(48 * 2 ** 20, max(32 * 2 ** 20, 6 * step_bytes)))
    compiler_params = pltpu.CompilerParams(
        dimension_semantics=("parallel", "arbitrary"),
        vmem_limit_bytes=vmem_limit)

    def run(in_kernel, lp, lt, cp):
        if in_kernel:
            in_specs = [pl.BlockSpec((tile, 4), tile_map),
                        pl.BlockSpec((tile, 4), tile_map),
                        pl.BlockSpec((tile, C), tile_map),
                        pl.BlockSpec((1, r, 128), tile_map3)]
        else:
            in_specs = [pl.BlockSpec((r, 4, 128), tile_map3),
                        pl.BlockSpec((r, 4, 128), tile_map3),
                        pl.BlockSpec((r, C, 128), tile_map3),
                        pl.BlockSpec((1, r, 128), tile_map3)]
        kernel = functools.partial(_focal_loss_kernel, n_anchors=N, tile=tile,
                                   n_inner=n_inner, relayout_in_kernel=in_kernel)
        return pl.pallas_call(
            kernel,
            out_shape=out_shape,
            grid_spec=pltpu.PrefetchScalarGridSpec(
                num_scalar_prefetch=0,
                grid=(cores, n_inner),
                in_specs=in_specs,
                out_specs=out_spec),
            compiler_params=compiler_params,
        )(lp, lt, cp, tgt)

    key = (C, str(jnp.dtype(cls_preds.dtype)))
    acc = None
    if relayout == "kernel" or (relayout == "auto" and key not in _HOST_RELAYOUT):
        try:
            acc = jax.block_until_ready(run(True, loc_p, loc_t, cls_p))
        except Exception:
            # In-kernel re-layout did not lower/run on this Mosaic version: fall
            # back to the host-side re-layout below (correctness unchanged).
            if relayout == "kernel":
                raise
            _HOST_RELAYOUT.add(key)
    if acc is None:
        # Host-side re-layout fallback (one extra HBM pass over the inputs).
        def host_dense(v):
            k = v.shape[-1]
            v = jnp.pad(v, ((0, n_tiles * tile - v.shape[0]), (0, 0)))
            return jnp.swapaxes(v.reshape(n_tiles * r, 128, k), 1, 2)
        acc = run(False, host_dense(loc_p), host_dense(loc_t), host_dense(cls_p))

    sums = jnp.sum(acc.reshape(cores, 3, r, 128), axis=(0, 2, 3))
    num_pos = jnp.maximum(sums[2], 1.0)
    return (sums[0] + sums[1]) / num_pos


def focal_loss_ref(loc_preds, loc_targets, cls_preds, cls_targets):
    """Pure-JAX reference mirroring the PyTorch module semantics."""
    pos = cls_targets > 0
    num_pos = jnp.maximum(jnp.sum(pos).astype(jnp.float32), 1.0)
    d = loc_preds.astype(jnp.float32) - loc_targets.astype(jnp.float32)
    ad = jnp.abs(d)
    sl1 = jnp.where(ad < 1.0, 0.5 * d * d, ad - 0.5)
    loc_loss = jnp.sum(sl1 * pos[..., None])

    C = cls_preds.shape[-1]
    p = jax.nn.softmax(cls_preds.astype(jnp.float32), axis=-1)
    p = jnp.clip(p, EPS, 1.0 - EPS)
    t = jax.nn.one_hot(cls_targets - 1, C, dtype=jnp.float32)   # 0 / -1 -> zero row
    valid = (cls_targets >= 0)[..., None].astype(jnp.float32)
    fl = ALPHA * (-t * jnp.log(p)) * (1.0 - p) ** GAMMA
    cls_loss = jnp.sum(fl * valid)
    return loc_loss / num_pos + cls_loss / num_pos


if __name__ == "__main__":
    key = jax.random.PRNGKey(0)
    k1, k2, k3, k4 = jax.random.split(key, 4)

    B, A, C = 2, 150, 16          # N = 300 anchors (exercises partial-tile masking)
    loc_preds = jax.random.normal(k1, (B, A, 4), dtype=jnp.float32)
    loc_targets = jax.random.normal(k2, (B, A, 4), dtype=jnp.float32)
    cls_preds = jax.random.normal(k3, (B, A, C), dtype=jnp.float32)
    # labels in {-1 (ignore), 0 (background), 1..C (classes)}
    cls_targets = jax.random.randint(k4, (B, A), -1, C + 1, dtype=jnp.int32)

    ref = focal_loss_ref(loc_preds, loc_targets, cls_preds, cls_targets)

    # Default config (large tile, two per-core partial accumulators).
    out = focal_loss_pallas(loc_preds, loc_targets, cls_preds, cls_targets)
    out = jax.block_until_ready(out)
    assert jnp.allclose(out, ref, rtol=1e-3, atol=1e-3), (out, ref)

    # Small-tile config: multi-tile accumulation + duplicated-tile clamping +
    # masking (the v7x parallel-axis path with an odd number of tiles).
    out2 = focal_loss_pallas(loc_preds, loc_targets, cls_preds, cls_targets,
                             tile_anchors=128)
    out2 = jax.block_until_ready(out2)
    assert jnp.allclose(out2, ref, rtol=1e-3, atol=1e-3), (out2, ref)

    print("KERNEL_OK")
</pallas_src>

<mosaic_0001>
module attributes {stable_mosaic.version = 11 : i64} {
  func.func @_focal_loss_kernel(%arg0: i32, %arg1: i32, %arg2: memref<256x4xf32, #tpu.memory_space<vmem>>, %arg3: memref<256x4xf32, #tpu.memory_space<vmem>>, %arg4: memref<256x16xf32, #tpu.memory_space<vmem>>, %arg5: memref<1x2x128xi32, #tpu.memory_space<vmem>>, %arg6: memref<3x2x128xf32, #tpu.memory_space<vmem>>) attributes {dimension_semantics = [#tpu.dimension_semantics<parallel>, #tpu.dimension_semantics<arbitrary>], iteration_bounds = array<i64: 2, 1>, scalar_prefetch = 0 : i64, scratch_operands = 0 : i64, tpu.core_type = #tpu.core_type<tc>, window_params = [{transform_indices = @transform_0, window_bounds = array<i64: 256, 4>}, {transform_indices = @transform_1, window_bounds = array<i64: 256, 4>}, {transform_indices = @transform_2, window_bounds = array<i64: 256, 16>}, {transform_indices = @transform_3, window_bounds = array<i64: 1, 2, 128>}, {transform_indices = @transform_4, window_bounds = array<i64: 3, 2, 128>}]} {
    %c0_i32 = arith.constant 0 : i32
    %0 = arith.cmpi eq, %arg1, %c0_i32 : i32
    %1 = arith.extui %0 : i1 to i32
    %c0_i32_0 = arith.constant 0 : i32
    %2 = arith.cmpi ne, %1, %c0_i32_0 : i32
    scf.if %2 {
      %cst_30 = arith.constant 0.000000e+00 : f32
      %79 = vector.broadcast %cst_30 : f32 to vector<3x2x128xf32>
      %c0_31 = arith.constant 0 : index
      %c0_32 = arith.constant 0 : index
      %c0_33 = arith.constant 0 : index
      %80 = vector.load %arg6[%c0_31, %c0_32, %c0_33] : memref<3x2x128xf32, #tpu.memory_space<vmem>>, vector<3x2x128xf32>
      tpu.vector_store %arg6[%c0_31, %c0_32, %c0_33], %79 {strides = array<i32>} : memref<3x2x128xf32, #tpu.memory_space<vmem>>, vector<3x2x128xf32>,
    } else {
    }
    %c1_i32 = arith.constant 1 : i32
    %3 = arith.muli %arg0, %c1_i32 : i32
    %4 = arith.addi %3, %arg1 : i32
    %c0 = arith.constant 0 : index
    %c0_1 = arith.constant 0 : index
    %5 = vector.load %arg2[%c0, %c0_1] : memref<256x4xf32, #tpu.memory_space<vmem>>, vector<256x4xf32>
    %6 = vector.shape_cast %5 : vector<256x4xf32> to vector<2x128x4xf32>
    %7 = tpu.transpose %6, [0, 2, 1] : vector<2x128x4xf32> -> vector<2x4x128xf32>
    %c0_2 = arith.constant 0 : index
    %c0_3 = arith.constant 0 : index
    %8 = vector.load %arg3[%c0_2, %c0_3] : memref<256x4xf32, #tpu.memory_space<vmem>>, vector<256x4xf32>
    %9 = vector.shape_cast %8 : vector<256x4xf32> to vector<2x128x4xf32>
    %10 = tpu.transpose %9, [0, 2, 1] : vector<2x128x4xf32> -> vector<2x4x128xf32>
    %c0_4 = arith.constant 0 : index
    %c0_5 = arith.constant 0 : index
    %11 = vector.load %arg4[%c0_4, %c0_5] : memref<256x16xf32, #tpu.memory_space<vmem>>, vector<256x16xf32>
    %12 = vector.shape_cast %11 : vector<256x16xf32> to vector<2x128x16xf32>
    %13 = tpu.transpose %12, [0, 2, 1] : vector<2x128x16xf32> -> vector<2x16x128xf32>
    %c0_6 = arith.constant 0 : index
    %c0_7 = arith.constant 0 : index
    %c0_8 = arith.constant 0 : index
    %14 = vector.load %arg5[%c0_6, %c0_7, %c0_8] : memref<1x2x128xi32, #tpu.memory_space<vmem>>, vector<1x2x128xi32>
    %15 = vector.shape_cast %14 : vector<1x2x128xi32> to vector<2x128xi32>
    %16 = tpu.iota {dimensions = array<i32: 0>} : vector<2x128xi32>
    %17 = tpu.iota {dimensions = array<i32: 1>} : vector<2x128xi32>
    %c128_i32 = arith.constant 128 : i32
    %18 = vector.broadcast %c128_i32 : i32 to vector<2x128xi32>
    %19 = arith.muli %16, %18 : vector<2x128xi32>
    %20 = arith.addi %19, %17 : vector<2x128xi32>
    %c256_i32 = arith.constant 256 : i32
    %21 = arith.muli %4, %c256_i32 : i32
    %c300_i32 = arith.constant 300 : i32
    %22 = arith.subi %c300_i32, %21 : i32
    %23 = vector.broadcast %22 : i32 to vector<2x128xi32>
    %24 = arith.cmpi slt, %20, %23 : vector<2x128xi32>
    %c0_i32_9 = arith.constant 0 : i32
    %25 = vector.broadcast %c0_i32_9 : i32 to vector<2x128xi32>
    %26 = arith.cmpi sgt, %15, %25 : vector<2x128xi32>
    %27 = arith.andi %26, %24 : vector<2x128xi1>
    %28 = arith.subf %7, %10 : vector<2x4x128xf32>
    %29 = math.absf %28 : vector<2x4x128xf32>
    %cst = arith.constant 1.000000e+00 : f32
    %30 = vector.broadcast %cst : f32 to vector<2x4x128xf32>
    %31 = arith.cmpf olt, %29, %30 : vector<2x4x128xf32>
    %cst_10 = arith.constant 5.000000e-01 : f32
    %32 = vector.broadcast %cst_10 : f32 to vector<2x4x128xf32>
    %33 = arith.mulf %32, %28 : vector<2x4x128xf32>
    %34 = arith.mulf %33, %28 : vector<2x4x128xf32>
    %cst_11 = arith.constant 5.000000e-01 : f32
    %35 = vector.broadcast %cst_11 : f32 to vector<2x4x128xf32>
    %36 = arith.subf %29, %35 : vector<2x4x128xf32>
    %37 = arith.select %31, %34, %36 : vector<2x4x128xi1>, vector<2x4x128xf32>
    %cst_12 = arith.constant dense<0.000000e+00> : vector<2x128xf32>
    %38 = vector.multi_reduction <add>, %37, %cst_12 [1] : vector<2x4x128xf32> to vector<2x128xf32>
    %cst_13 = arith.constant dense<0xFF800000> : vector<2x128xf32>
    %39 = vector.multi_reduction <maximumf>, %13, %cst_13 [1] : vector<2x16x128xf32> to vector<2x128xf32>
    %40 = vector.shape_cast %39 : vector<2x128xf32> to vector<2x1x128xf32>
    %41 = vector.broadcast %40 : vector<2x1x128xf32> to vector<2x16x128xf32>
    %42 = arith.subf %13, %41 : vector<2x16x128xf32>
    %43 = math.exp %42 : vector<2x16x128xf32>
    %cst_14 = arith.constant dense<0.000000e+00> : vector<2x128xf32>
    %44 = vector.multi_reduction <add>, %43, %cst_14 [1] : vector<2x16x128xf32> to vector<2x128xf32>
    %45 = math.log %44 : vector<2x128xf32>
    %46 = tpu.iota {dimensions = array<i32: 1>} : vector<2x16x128xi32>
    %c1_i32_15 = arith.constant 1 : i32
    %47 = vector.broadcast %c1_i32_15 : i32 to vector<2x16x128xi32>
    %48 = arith.addi %46, %47 : vector<2x16x128xi32>
    %49 = vector.shape_cast %15 : vector<2x128xi32> to vector<2x1x128xi32>
    %50 = vector.broadcast %49 : vector<2x1x128xi32> to vector<2x16x128xi32>
    %51 = arith.cmpi eq, %48, %50 : vector<2x16x128xi32>
    %cst_16 = arith.constant 0.000000e+00 : f32
    %52 = vector.broadcast %cst_16 : f32 to vector<2x16x128xf32>
    %53 = arith.select %51, %42, %52 : vector<2x16x128xi1>, vector<2x16x128xf32>
    %cst_17 = arith.constant dense<0.000000e+00> : vector<2x128xf32>
    %54 = vector.multi_reduction <add>, %53, %cst_17 [1] : vector<2x16x128xf32> to vector<2x128xf32>
    %55 = arith.subf %54, %45 : vector<2x128xf32>
    %cst_18 = arith.constant -16.1180954 : f32
    %cst_19 = arith.constant -1.00000008E-7 : f32
    %56 = vector.broadcast %cst_18 : f32 to vector<2x128xf32>
    %57 = arith.maximumf %56, %55 : vector<2x128xf32>
    %58 = vector.broadcast %cst_19 : f32 to vector<2x128xf32>
    %59 = arith.minimumf %58, %57 : vector<2x128xf32>
    %60 = math.exp %59 : vector<2x128xf32>
    %cst_20 = arith.constant 1.000000e+00 : f32
    %61 = vector.broadcast %cst_20 : f32 to vector<2x128xf32>
    %62 = arith.subf %61, %60 : vector<2x128xf32>
    %cst_21 = arith.constant -2.500000e-01 : f32
    %63 = vector.broadcast %cst_21 : f32 to vector<2x128xf32>
    %64 = arith.mulf %63, %59 : vector<2x128xf32>
    %65 = arith.mulf %64, %62 : vector<2x128xf32>
    %66 = arith.mulf %65, %62 : vector<2x128xf32>
    %cst_22 = arith.constant 0.000000e+00 : f32
    %67 = vector.broadcast %cst_22 : f32 to vector<2x128xf32>
    %cst_23 = arith.constant 1.000000e+00 : f32
    %68 = vector.broadcast %cst_23 : f32 to vector<2x128xf32>
    %c0_24 = arith.constant 0 : index
    %c0_25 = arith.constant 0 : index
    %c0_26 = arith.constant 0 : index
    %69 = vector.load %arg6[%c0_24, %c0_25, %c0_26] : memref<3x2x128xf32, #tpu.memory_space<vmem>>, vector<3x2x128xf32>
    %70 = arith.select %27, %38, %67 : vector<2x128xi1>, vector<2x128xf32>
    %71 = arith.select %27, %66, %67 : vector<2x128xi1>, vector<2x128xf32>
    %72 = arith.select %27, %68, %67 : vector<2x128xi1>, vector<2x128xf32>
    %73 = vector.shape_cast %70 : vector<2x128xf32> to vector<1x2x128xf32>
    %74 = vector.shape_cast %71 : vector<2x128xf32> to vector<1x2x128xf32>
    %75 = vector.shape_cast %72 : vector<2x128xf32> to vector<1x2x128xf32>
    %76 = tpu.concatenate %73, %74, %75 in 0 : vector<1x2x128xf32>, vector<1x2x128xf32>, vector<1x2x128xf32> -> vector<3x2x128xf32>
    %77 = arith.addf %69, %76 : vector<3x2x128xf32>
    %c0_27 = arith.constant 0 : index
    %c0_28 = arith.constant 0 : index
    %c0_29 = arith.constant 0 : index
    %78 = vector.load %arg6[%c0_27, %c0_28, %c0_29] : memref<3x2x128xf32, #tpu.memory_space<vmem>>, vector<3x2x128xf32>
    tpu.vector_store %arg6[%c0_27, %c0_28, %c0_29], %77 {strides = array<i32>} : memref<3x2x128xf32, #tpu.memory_space<vmem>>, vector<3x2x128xf32>,
    return
  }
  func.func @transform_0(%arg0: i32, %arg1: i32) -> (i32, i32) {
    %c1_i32 = arith.constant 1 : i32
    %0 = arith.muli %arg0, %c1_i32 : i32
    %1 = arith.addi %0, %arg1 : i32
    %c1_i32_0 = arith.constant 1 : i32
    %2 = arith.minsi %1, %c1_i32_0 : i32
    %c0_i32 = arith.constant 0 : i32
    %c0_i32_1 = arith.constant 0 : i32
    return %2, %c0_i32 : i32, i32
  }
  func.func @transform_1(%arg0: i32, %arg1: i32) -> (i32, i32) {
    %c1_i32 = arith.constant 1 : i32
    %0 = arith.muli %arg0, %c1_i32 : i32
    %1 = arith.addi %0, %arg1 : i32
    %c1_i32_0 = arith.constant 1 : i32
    %2 = arith.minsi %1, %c1_i32_0 : i32
    %c0_i32 = arith.constant 0 : i32
    %c0_i32_1 = arith.constant 0 : i32
    return %2, %c0_i32 : i32, i32
  }
  func.func @transform_2(%arg0: i32, %arg1: i32) -> (i32, i32) {
    %c1_i32 = arith.constant 1 : i32
    %0 = arith.muli %arg0, %c1_i32 : i32
    %1 = arith.addi %0, %arg1 : i32
    %c1_i32_0 = arith.constant 1 : i32
    %2 = arith.minsi %1, %c1_i32_0 : i32
    %c0_i32 = arith.constant 0 : i32
    %c0_i32_1 = arith.constant 0 : i32
    return %2, %c0_i32 : i32, i32
  }
  func.func @transform_3(%arg0: i32, %arg1: i32) -> (i32, i32, i32) {
    %c1_i32 = arith.constant 1 : i32
    %0 = arith.muli %arg0, %c1_i32 : i32
    %1 = arith.addi %0, %arg1 : i32
    %c1_i32_0 = arith.constant 1 : i32
    %2 = arith.minsi %1, %c1_i32_0 : i32
    %c0_i32 = arith.constant 0 : i32
    %c0_i32_1 = arith.constant 0 : i32
    %c0_i32_2 = arith.constant 0 : i32
    return %2, %c0_i32, %c0_i32_1 : i32, i32, i32
  }
  func.func @transform_4(%arg0: i32, %arg1: i32) -> (i32, i32, i32) {
    %c0_i32 = arith.constant 0 : i32
    %c0_i32_0 = arith.constant 0 : i32
    %c0_i32_1 = arith.constant 0 : i32
    return %arg0, %c0_i32, %c0_i32_0 : i32, i32, i32
  }
}

module attributes {stable_mosaic.version = 11 : i64} {
  func.func @_focal_loss_kernel(%arg0: i32, %arg1: i32, %arg2: memref<2x4x128xf32, #tpu.memory_space<vmem>>, %arg3: memref<2x4x128xf32, #tpu.memory_space<vmem>>, %arg4: memref<2x16x128xf32, #tpu.memory_space<vmem>>, %arg5: memref<1x2x128xi32, #tpu.memory_space<vmem>>, %arg6: memref<3x2x128xf32, #tpu.memory_space<vmem>>) attributes {dimension_semantics = [#tpu.dimension_semantics<parallel>, #tpu.dimension_semantics<arbitrary>], iteration_bounds = array<i64: 2, 1>, scalar_prefetch = 0 : i64, scratch_operands = 0 : i64, tpu.core_type = #tpu.core_type<tc>, window_params = [{transform_indices = @transform_0, window_bounds = array<i64: 2, 4, 128>}, {transform_indices = @transform_1, window_bounds = array<i64: 2, 4, 128>}, {transform_indices = @transform_2, window_bounds = array<i64: 2, 16, 128>}, {transform_indices = @transform_3, window_bounds = array<i64: 1, 2, 128>}, {transform_indices = @transform_4, window_bounds = array<i64: 3, 2, 128>}]} {
    %c0_i32 = arith.constant 0 : i32
    %0 = arith.cmpi eq, %arg1, %c0_i32 : i32
    %1 = arith.extui %0 : i1 to i32
    %c0_i32_0 = arith.constant 0 : i32
    %2 = arith.cmpi ne, %1, %c0_i32_0 : i32
    scf.if %2 {
      %cst_33 = arith.constant 0.000000e+00 : f32
      %73 = vector.broadcast %cst_33 : f32 to vector<3x2x128xf32>
      %c0_34 = arith.constant 0 : index
      %c0_35 = arith.constant 0 : index
      %c0_36 = arith.constant 0 : index
      %74 = vector.load %arg6[%c0_34, %c0_35, %c0_36] : memref<3x2x128xf32, #tpu.memory_space<vmem>>, vector<3x2x128xf32>
      tpu.vector_store %arg6[%c0_34, %c0_35, %c0_36], %73 {strides = array<i32>} : memref<3x2x128xf32, #tpu.memory_space<vmem>>, vector<3x2x128xf32>,
    } else {
    }
    %c1_i32 = arith.constant 1 : i32
    %3 = arith.muli %arg0, %c1_i32 : i32
    %4 = arith.addi %3, %arg1 : i32
    %c0 = arith.constant 0 : index
    %c0_1 = arith.constant 0 : index
    %c0_2 = arith.constant 0 : index
    %5 = vector.load %arg2[%c0, %c0_1, %c0_2] : memref<2x4x128xf32, #tpu.memory_space<vmem>>, vector<2x4x128xf32>
    %c0_3 = arith.constant 0 : index
    %c0_4 = arith.constant 0 : index
    %c0_5 = arith.constant 0 : index
    %6 = vector.load %arg3[%c0_3, %c0_4, %c0_5] : memref<2x4x128xf32, #tpu.memory_space<vmem>>, vector<2x4x128xf32>
    %c0_6 = arith.constant 0 : index
    %c0_7 = arith.constant 0 : index
    %c0_8 = arith.constant 0 : index
    %7 = vector.load %arg4[%c0_6, %c0_7, %c0_8] : memref<2x16x128xf32, #tpu.memory_space<vmem>>, vector<2x16x128xf32>
    %c0_9 = arith.constant 0 : index
    %c0_10 = arith.constant 0 : index
    %c0_11 = arith.constant 0 : index
    %8 = vector.load %arg5[%c0_9, %c0_10, %c0_11] : memref<1x2x128xi32, #tpu.memory_space<vmem>>, vector<1x2x128xi32>
    %9 = vector.shape_cast %8 : vector<1x2x128xi32> to vector<2x128xi32>
    %10 = tpu.iota {dimensions = array<i32: 0>} : vector<2x128xi32>
    %11 = tpu.iota {dimensions = array<i32: 1>} : vector<2x128xi32>
    %c128_i32 = arith.constant 128 : i32
    %12 = vector.broadcast %c128_i32 : i32 to vector<2x128xi32>
    %13 = arith.muli %10, %12 : vector<2x128xi32>
    %14 = arith.addi %13, %11 : vector<2x128xi32>
    %c256_i32 = arith.constant 256 : i32
    %15 = arith.muli %4, %c256_i32 : i32
    %c300_i32 = arith.constant 300 : i32
    %16 = arith.subi %c300_i32, %15 : i32
    %17 = vector.broadcast %16 : i32 to vector<2x128xi32>
    %18 = arith.cmpi slt, %14, %17 : vector<2x128xi32>
    %c0_i32_12 = arith.constant 0 : i32
    %19 = vector.broadcast %c0_i32_12 : i32 to vector<2x128xi32>
    %20 = arith.cmpi sgt, %9, %19 : vector<2x128xi32>
    %21 = arith.andi %20, %18 : vector<2x128xi1>
    %22 = arith.subf %5, %6 : vector<2x4x128xf32>
    %23 = math.absf %22 : vector<2x4x128xf32>
    %cst = arith.constant 1.000000e+00 : f32
    %24 = vector.broadcast %cst : f32 to vector<2x4x128xf32>
    %25 = arith.cmpf olt, %23, %24 : vector<2x4x128xf32>
    %cst_13 = arith.constant 5.000000e-01 : f32
    %26 = vector.broadcast %cst_13 : f32 to vector<2x4x128xf32>
    %27 = arith.mulf %26, %22 : vector<2x4x128xf32>
    %28 = arith.mulf %27, %22 : vector<2x4x128xf32>
    %cst_14 = arith.constant 5.000000e-01 : f32
    %29 = vector.broadcast %cst_14 : f32 to vector<2x4x128xf32>
    %30 = arith.subf %23, %29 : vector<2x4x128xf32>
    %31 = arith.select %25, %28, %30 : vector<2x4x128xi1>, vector<2x4x128xf32>
    %cst_15 = arith.constant dense<0.000000e+00> : vector<2x128xf32>
    %32 = vector.multi_reduction <add>, %31, %cst_15 [1] : vector<2x4x128xf32> to vector<2x128xf32>
    %cst_16 = arith.constant dense<0xFF800000> : vector<2x128xf32>
    %33 = vector.multi_reduction <maximumf>, %7, %cst_16 [1] : vector<2x16x128xf32> to vector<2x128xf32>
    %34 = vector.shape_cast %33 : vector<2x128xf32> to vector<2x1x128xf32>
    %35 = vector.broadcast %34 : vector<2x1x128xf32> to vector<2x16x128xf32>
    %36 = arith.subf %7, %35 : vector<2x16x128xf32>
    %37 = math.exp %36 : vector<2x16x128xf32>
    %cst_17 = arith.constant dense<0.000000e+00> : vector<2x128xf32>
    %38 = vector.multi_reduction <add>, %37, %cst_17 [1] : vector<2x16x128xf32> to vector<2x128xf32>
    %39 = math.log %38 : vector<2x128xf32>
    %40 = tpu.iota {dimensions = array<i32: 1>} : vector<2x16x128xi32>
    %c1_i32_18 = arith.constant 1 : i32
    %41 = vector.broadcast %c1_i32_18 : i32 to vector<2x16x128xi32>
    %42 = arith.addi %40, %41 : vector<2x16x128xi32>
    %43 = vector.shape_cast %9 : vector<2x128xi32> to vector<2x1x128xi32>
    %44 = vector.broadcast %43 : vector<2x1x128xi32> to vector<2x16x128xi32>
    %45 = arith.cmpi eq, %42, %44 : vector<2x16x128xi32>
    %cst_19 = arith.constant 0.000000e+00 : f32
    %46 = vector.broadcast %cst_19 : f32 to vector<2x16x128xf32>
    %47 = arith.select %45, %36, %46 : vector<2x16x128xi1>, vector<2x16x128xf32>
    %cst_20 = arith.constant dense<0.000000e+00> : vector<2x128xf32>
    %48 = vector.multi_reduction <add>, %47, %cst_20 [1] : vector<2x16x128xf32> to vector<2x128xf32>
    %49 = arith.subf %48, %39 : vector<2x128xf32>
    %cst_21 = arith.constant -16.1180954 : f32
    %cst_22 = arith.constant -1.00000008E-7 : f32
    %50 = vector.broadcast %cst_21 : f32 to vector<2x128xf32>
    %51 = arith.maximumf %50, %49 : vector<2x128xf32>
    %52 = vector.broadcast %cst_22 : f32 to vector<2x128xf32>
    %53 = arith.minimumf %52, %51 : vector<2x128xf32>
    %54 = math.exp %53 : vector<2x128xf32>
    %cst_23 = arith.constant 1.000000e+00 : f32
    %55 = vector.broadcast %cst_23 : f32 to vector<2x128xf32>
    %56 = arith.subf %55, %54 : vector<2x128xf32>
    %cst_24 = arith.constant -2.500000e-01 : f32
    %57 = vector.broadcast %cst_24 : f32 to vector<2x128xf32>
    %58 = arith.mulf %57, %53 : vector<2x128xf32>
    %59 = arith.mulf %58, %56 : vector<2x128xf32>
    %60 = arith.mulf %59, %56 : vector<2x128xf32>
    %cst_25 = arith.constant 0.000000e+00 : f32
    %61 = vector.broadcast %cst_25 : f32 to vector<2x128xf32>
    %cst_26 = arith.constant 1.000000e+00 : f32
    %62 = vector.broadcast %cst_26 : f32 to vector<2x128xf32>
    %c0_27 = arith.constant 0 : index
    %c0_28 = arith.constant 0 : index
    %c0_29 = arith.constant 0 : index
    %63 = vector.load %arg6[%c0_27, %c0_28, %c0_29] : memref<3x2x128xf32, #tpu.memory_space<vmem>>, vector<3x2x128xf32>
    %64 = arith.select %21, %32, %61 : vector<2x128xi1>, vector<2x128xf32>
    %65 = arith.select %21, %60, %61 : vector<2x128xi1>, vector<2x128xf32>
    %66 = arith.select %21, %62, %61 : vector<2x128xi1>, vector<2x128xf32>
    %67 = vector.shape_cast %64 : vector<2x128xf32> to vector<1x2x128xf32>
    %68 = vector.shape_cast %65 : vector<2x128xf32> to vector<1x2x128xf32>
    %69 = vector.shape_cast %66 : vector<2x128xf32> to vector<1x2x128xf32>
    %70 = tpu.concatenate %67, %68, %69 in 0 : vector<1x2x128xf32>, vector<1x2x128xf32>, vector<1x2x128xf32> -> vector<3x2x128xf32>
    %71 = arith.addf %63, %70 : vector<3x2x128xf32>
    %c0_30 = arith.constant 0 : index
    %c0_31 = arith.constant 0 : index
    %c0_32 = arith.constant 0 : index
    %72 = vector.load %arg6[%c0_30, %c0_31, %c0_32] : memref<3x2x128xf32, #tpu.memory_space<vmem>>, vector<3x2x128xf32>
    tpu.vector_store %arg6[%c0_30, %c0_31, %c0_32], %71 {strides = array<i32>} : memref<3x2x128xf32, #tpu.memory_space<vmem>>, vector<3x2x128xf32>,
    return
  }
  func.func @transform_0(%arg0: i32, %arg1: i32) -> (i32, i32, i32) {
    %c1_i32 = arith.constant 1 : i32
    %0 = arith.muli %arg0, %c1_i32 : i32
    %1 = arith.addi %0, %arg1 : i32
    %c1_i32_0 = arith.constant 1 : i32
    %2 = arith.minsi %1, %c1_i32_0 : i32
    %c0_i32 = arith.constant 0 : i32
    %c0_i32_1 = arith.constant 0 : i32
    %c0_i32_2 = arith.constant 0 : i32
    return %2, %c0_i32, %c0_i32_1 : i32, i32, i32
  }
  func.func @transform_1(%arg0: i32, %arg1: i32) -> (i32, i32, i32) {
    %c1_i32 = arith.constant 1 : i32
    %0 = arith.muli %arg0, %c1_i32 : i32
    %1 = arith.addi %0, %arg1 : i32
    %c1_i32_0 = arith.constant 1 : i32
    %2 = arith.minsi %1, %c1_i32_0 : i32
    %c0_i32 = arith.constant 0 : i32
    %c0_i32_1 = arith.constant 0 : i32
    %c0_i32_2 = arith.constant 0 : i32
    return %2, %c0_i32, %c0_i32_1 : i32, i32, i32
  }
  func.func @transform_2(%arg0: i32, %arg1: i32) -> (i32, i32, i32) {
    %c1_i32 = arith.constant 1 : i32
    %0 = arith.muli %arg0, %c1_i32 : i32
    %1 = arith.addi %0, %arg1 : i32
    %c1_i32_0 = arith.constant 1 : i32
    %2 = arith.minsi %1, %c1_i32_0 : i32
    %c0_i32 = arith.constant 0 : i32
    %c0_i32_1 = arith.constant 0 : i32
    %c0_i32_2 = arith.constant 0 : i32
    return %2, %c0_i32, %c0_i32_1 : i32, i32, i32
  }
  func.func @transform_3(%arg0: i32, %arg1: i32) -> (i32, i32, i32) {
    %c1_i32 = arith.constant 1 : i32
    %0 = arith.muli %arg0, %c1_i32 : i32
    %1 = arith.addi %0, %arg1 : i32
    %c1_i32_0 = arith.constant 1 : i32
    %2 = arith.minsi %1, %c1_i32_0 : i32
    %c0_i32 = arith.constant 0 : i32
    %c0_i32_1 = arith.constant 0 : i32
    %c0_i32_2 = arith.constant 0 : i32
    return %2, %c0_i32, %c0_i32_1 : i32, i32, i32
  }
  func.func @transform_4(%arg0: i32, %arg1: i32) -> (i32, i32, i32) {
    %c0_i32 = arith.constant 0 : i32
    %c0_i32_0 = arith.constant 0 : i32
    %c0_i32_1 = arith.constant 0 : i32
    return %arg0, %c0_i32, %c0_i32_0 : i32, i32, i32
  }
}

</mosaic_0001>

<bundles_post_ra>
// kernel: tpu_custom_call.1
= control target key start
LH: loop header
LB: loop body
LE: loop exit
PB: predicated region body
PF: predicated region fallthrough
CT: control target
= control target key end

     0   :  { %9 = vsyncpa [#allocation3], 0  ;;  %s1532_s0 = inlined_call_operand.vmem [shape: f32[300,4], index: 0, kind: input, shape index: {}]   ;;  %s1533_s1 = inlined_call_operand.vmem [shape: f32[300,4], index: 1, kind: input, shape index: {}]   ;;  %s1534_s2 = inlined_call_operand.vmem [shape: f32[300,16], index: 2, kind: input, shape index: {}]   ;;  %s1535_s3 = inlined_call_operand.vmem [shape: s32[2,2,128], index: 3, kind: input, shape index: {}]   ;;  %s1536_s4 = inlined_call_operand.hbm [shape: f32[6,2,128], index: 4, kind: output, shape index: {}]  }
   0x1   :  { %11 = vsyncpa [#allocation3 + $0x1], 0  ;;  %s1218_s15 = smov 0   ;;  %s1220_s16 = smov 0  }
   0x2   :  { %s1222_s17 = smov 0   ;;  %s1224_s18 = smov 0  }
   0x3   :  { %s1226_s19 = smov 0   ;;  %s1228_s20 = smov 0  }
   0x4 LB: > { %s1012_s21 = sadd.s32 4294967295, %s1186_s20   ;;  %s1013_s22 = sadd.s32 4294967294, %s1186_s20   ;;  %s1186_s20 = sphi %s1228_s20, %s17_s20   ;;  %s1182_s19 = sphi %s1226_s19, %s1545_s19   ;;  %s1178_s18 = sphi %s1224_s18, %s1544_s18   ;;  %s1174_s17 = sphi %s1222_s17, %s1543_s17   ;;  %s1170_s16 = sphi %s1220_s16, %s1542_s16   ;;  %s1166_s15 = sphi %s1218_s15, %s1541_s15  }
   0x5   : > { %s29_s23 = sadd.s32 1, %s1182_s19  ;;  %s164_s24 = sadd.s32 1, %s1174_s17 }
   0x6   : > { %p31_p0 = scmp.ge.s32.totalorder %s29_s23, 2  ;;  %p174_p1 = scmp.ne.s32.totalorder %s1174_s17, %s1170_s16 }
   0x7   : > { %p175_p2 = scmp.eq.s32.totalorder %s1012_s21, 1  ;;  %p180_p3 = scmp.ne.s32.totalorder %s1170_s16, %s1166_s15 }
   0x8   : > { %s1547_s23 = smov (%p31_p0, %s29_s23), 0  ;;  %p181_p5 = scmp.eq.s32.totalorder %s1013_s22, 1 }
   0x9   : > { %p1258_p4 = por %p175_p2, %p174_p1  ;;  %s161_s26 = ssub.s32 %s1182_s19, %s1547_s23 }
   0xa   : > { %p1016_p6 = scmp.ge.s32.totalorder %s1186_s20, 1  ;;  %p162_p7 = scmp.eq.s32.totalorder %s161_s26, 0 }
   0xb   : > { %p1265_p8 = por %p181_p5, %p180_p3  ;;  %p281_p9 = scmp.lt.s32.totalorder %s1186_s20, 3 }
   0xc   : > { %s1271_s28 = scalar_select %p162_p7, %s1174_s17, %s164_s24  }
   0xd   : > { %p282_p10 = pnand %p1016_p6, %p281_p9 }
   0xe   : > { %p346_p11 = scmp.lt.s32.totalorder (!%p282_p10), %s1178_s18, 1  ;;  %s1027_s6 = sshll.u32 (!%p282_p10), %s1178_s18, 8 }
   0xf   : > { %285 = sbr.rel (%p282_p10) target bundleno = 333 (0x14d), region = 36  ;;  %s720_s7 = ssub.s32 (!%p282_p10), 300, %s1027_s6 }
  0x10   : > { %s1190_s14 = smov (!%p282_p10), [#allocation2]  }
  0x14   : > { %s1277_s29 = scalar_select %p346_p11, %s1178_s18, 1  ;;  %v713_v32 = vlaneseq  ;;  %v1188_v35 = vmov 1966171168   ;;  %vm739_vm7 = vcmask 1043456   ;;  %vm876_vm10 = vcmask 1041409  }
  0x15   : > { %v802_v36 = vunpack.c.l.s4 %v1188_v35 }
  0x16   : > { %s1017_s30 = sshll.u32 %s1277_s29, 5  ;;  %s1551_s29 = smov (!%p346_p11, %s1277_s29), 1  ;;  %v1332_v37 = vshrl.u32 %v713_v32, 7 }
  0x17   : > { %p353_p12 = scmp.lt.s32.totalorder %s1017_s30, 37  ;;  %s1026_s12 = sshll.u32 %s1551_s29, 1  ;;  %v803_v38 = vunpack.c.0.s8 %v802_v36  ;;  %v721_v36 = vstv %s720_s7 }
  0x18   : > { %s411_s21 = scalar_lea.vmem %s1535_s3, %s1026_s12  ;;  %v798_v43 = vadd.s32 8, %v1332_v37  ;;  %v825_v48 = vsub.s32 0, %v1332_v37  ;;  %v1348_v49 = vadd.s32 1, %v1332_v37  ;;  %s342_s29 = sand.u32 1, %s1170_s16  }
  0x19   : > { %s1549_s30 = smov (!%p353_p12, %s1017_s30), 37  ;;  %v1337_v39 = vld [vmem:[%s411_s21] sm:$0x3]  ;;  %v806_v42 = vsub.s32 %v803_v38, %v1332_v37  ;;  %s1114_s21 = sshll.u32 %s1190_s14, 4  ;;  %s1115_s21 = int_to_ptr.vmem [resolvable:$false] %s1114_s21 }
  0x1a   : > { %s1280_s5 = sshll.u32 %s1549_s30, 3  ;;  %v1350_v50 = vadd.s32 1, %v798_v43  ;;  %s1034_s30 = smul.u32 6, %s342_s29  ;;  %vm723_vm5 = vcmp.gt.s32.totalorder %v1337_v39, 0 }
  0x1b   : > { %s1286_s8 = scalar_lea.vmem %s1532_s0, %s1280_s5  ;;  %s1324_s11 = scalar_lea.vmem %s1534_s2, %s1280_s5  ;;  %v807_v44 = vrot.slane %v1337_v39, %v806_v42 }
  0x1c   : > { %v440_v0 = vld [vmem:[%s1286_s8 + $0x80] sm:$0xff]  ;;  %v441_v2 = vld [vmem:[%s1286_s8 + $0x88] sm:$0xff]  ;;  %v442_v4 = vld [vmem:[%s1286_s8 + $0x90] sm:$0xff]  ;;  %s1394_s26 = scalar_lea.vmem %s1533_s1, %s1280_s5  ;;  %s1409_s5 = scalar_lea.vmem [#allocation2], %s1034_s30 }
  0x1d   : > { %v424_v1 = vld [vmem:[%s1286_s8] sm:$0xff]  ;;  %488 = vxpose.xlu1.b32.start [1/16] (narrow) %v440_v0, 8  ;;  %v425_v3 = vld [vmem:[%s1286_s8 + $0x8] sm:$0xff]  ;;  %v426_v5 = vld [vmem:[%s1286_s8 + $0x10] sm:$0xff]  ;;  %v808_v47 = vcombine.high %v807_v44, %v807_v44  ;;  %v815_v57 = vrot.slane %v807_v44, %v806_v42  ;;  %s906_s9 = sshll.u32 %s1409_s5, 4  ;;  %s1116_s22 = scalar_lea.vmem %s1115_s21, 192  ;;  %s1482_s9 = int_to_ptr.vmem [resolvable:$true] %s906_s9 }
  0x1e   : > { %456 = vxpose.xlu0.b32.start [1/16] (narrow) %v424_v1, 8  ;;  %v443_v6 = vld [vmem:[%s1286_s8 + $0x98] sm:$0xff]  ;;  %v444_v8 = vld [vmem:[%s1286_s8 + $0xa0] sm:$0xff]  ;;  %v445_v10 = vld [vmem:[%s1286_s8 + $0xa8] sm:$0xff]  ;;  %s1110_s13 = scalar_lea.vmem %s1482_s9, 96  ;;  %p1117_p2 = scmp.lt.s32.totalorder %s1482_s9, %s1115_s21 }
  0x1f   : > { %v427_v7 = vld [vmem:[%s1286_s8 + $0x18] sm:$0xff]  ;;  %v428_v9 = vld [vmem:[%s1286_s8 + $0x20] sm:$0xff]  ;;  %v429_v11 = vld [vmem:[%s1286_s8 + $0x28] sm:$0xff]  ;;  %v822_v51 = vrot.slane %v808_v47, %v806_v42  ;;  %v1362_v58 = vrot.slane %v815_v57, %v825_v48  ;;  %p1111_p13 = scmp.ne.s32.totalorder %s1482_s9, %s1110_s13  ;;  %p1118_p3 = scmp.lt.s32.totalorder %s1116_s22, %s1110_s13 }
  0x20   : > { %v446_v12 = vld [vmem:[%s1286_s8 + $0xb0] sm:$0xff]  ;;  %v447_v14 = vld [vmem:[%s1286_s8 + $0xb8] sm:$0xff]  ;;  %v448_v16 = vld [vmem:[%s1286_s8 + $0xc0] sm:$0xff] }
  0x21   : > { %489 = vxpose.xlu1.b32.cont [2/16] (narrow) %v441_v2, 8  ;;  %v430_v13 = vld [vmem:[%s1286_s8 + $0x30] sm:$0xff]  ;;  %v431_v15 = vld [vmem:[%s1286_s8 + $0x38] sm:$0xff]  ;;  %v432_v17 = vld [vmem:[%s1286_s8 + $0x40] sm:$0xff]  ;;  %v1354_v54 = vrot.slane %v822_v51, %v825_v48  ;;  %vm831_vm2 = vcmp.eq.s32.totalorder %v1348_v49, %v1362_v58  ;;  %vm832_vm3 = vcmp.eq.s32.totalorder %v1350_v50, %v1362_v58  ;;  %p1112_p0 = pnand %p1111_p13, %p1258_p4  ;;  %p1119_p5 = por %p1118_p3, %p1117_p2 }
  0x22   : > { %457 = vxpose.xlu0.b32.cont [2/16] (narrow) %v425_v3, 8  ;;  %v449_v18 = vld [vmem:[%s1286_s8 + $0xc8] sm:$0xff]  ;;  %v450_v20 = vld [vmem:[%s1286_s8 + $0xd0] sm:$0xff]  ;;  %v451_v22 = vld [vmem:[%s1286_s8 + $0xd8] sm:$0xff] }
  0x23   : > { %v433_v19 = vld [vmem:[%s1286_s8 + $0x48] sm:$0xff]  ;;  %v434_v21 = vld [vmem:[%s1286_s8 + $0x50] sm:$0xff]  ;;  %v435_v23 = vld [vmem:[%s1286_s8 + $0x58] sm:$0xff]  ;;  %vm833_vm0 = vcmp.eq.s32.totalorder %v1348_v49, %v1354_v54  ;;  %vm834_vm1 = vcmp.eq.s32.totalorder %v1350_v50, %v1354_v54  ;;  %p1113_p1 = pneg %p1112_p0 }
  0x24   : > { %v452_v24 = vld [vmem:[%s1286_s8 + $0xe0] sm:$0xff]  ;;  %v453_v26 = vld [vmem:[%s1286_s8 + $0xe8] sm:$0xff]  ;;  %v454_v28 = vld [vmem:[%s1286_s8 + $0xf0] sm:$0xff] }
  0x25   : > { %490 = vxpose.xlu1.b32.cont [3/16] (narrow) %v442_v4, 8  ;;  %v436_v25 = vld [vmem:[%s1286_s8 + $0x60] sm:$0xff]  ;;  %v437_v27 = vld [vmem:[%s1286_s8 + $0x68] sm:$0xff]  ;;  %v438_v29 = vld [vmem:[%s1286_s8 + $0x70] sm:$0xff]  ;;  %p1120_p6 = pnand %p1119_p5, %p1113_p1 }
  0x26   : > { %458 = vxpose.xlu0.b32.cont [3/16] (narrow) %v426_v5, 8  ;;  %v455_v30 = vld [vmem:[%s1286_s8 + $0xf8] sm:$0xff]  ;;  %v632_v33 = vld [vmem:[%s1324_s11 + $0x80] sm:$0xff]  ;;  %v633_v40 = vld [vmem:[%s1324_s11 + $0x88] sm:$0xff] }
  0x27   : > { %v439_v31 = vld [vmem:[%s1286_s8 + $0x78] sm:$0xff]  ;;  %v616_v34 = vld [vmem:[%s1324_s11] sm:$0xff]  ;;  %v617_v41 = vld [vmem:[%s1324_s11 + $0x8] sm:$0xff]  ;;  %s1033_s8 = smul.u32 96, %s1178_s18  ;;  %s1487_s18 = scalar_lea.sflag [#allocation3], %s342_s29 }
  0x28   : > { %v634_v45 = vld [vmem:[%s1324_s11 + $0x90] sm:$0xff]  ;;  %v635_v52 = vld [vmem:[%s1324_s11 + $0x98] sm:$0xff]  ;;  %v636_v55 = vld [vmem:[%s1324_s11 + $0xa0] sm:$0xff] }
  0x29   : > { %491 = vxpose.xlu1.b32.cont [4/16] (narrow) %v443_v6, 8  ;;  %v618_v46 = vld [vmem:[%s1324_s11 + $0x10] sm:$0xff]  ;;  %v619_v53 = vld [vmem:[%s1324_s11 + $0x18] sm:$0xff]  ;;  %v620_v56 = vld [vmem:[%s1324_s11 + $0x20] sm:$0xff]  ;;  %s1480_s12 = scalar_lea.hbm %s1536_s4, %s1033_s8 }
  0x2a   : > { %459 = vxpose.xlu0.b32.cont [4/16] (narrow) %v427_v7, 8  ;;  %v637_v59 = vld [vmem:[%s1324_s11 + $0xa8] sm:$0xff]  ;;  %v638_v61 = vld [vmem:[%s1324_s11 + $0xb0] sm:$0xff]  ;;  %v639_v63 = vld [vmem:[%s1324_s11 + $0xb8] sm:$0xff] }
  0x2b   : > { %v621_v60 = vld [vmem:[%s1324_s11 + $0x28] sm:$0xff]  ;;  %v622_v62 = vld [vmem:[%s1324_s11 + $0x30] sm:$0xff]  ;;  %v623_v0 = vld [vmem:[%s1324_s11 + $0x38] sm:$0xff] }
  0x2c   : > { %v640_v1 = vld [vmem:[%s1324_s11 + $0xc0] sm:$0xff]  ;;  %v641_v3 = vld [vmem:[%s1324_s11 + $0xc8] sm:$0xff]  ;;  %v642_v5 = vld [vmem:[%s1324_s11 + $0xd0] sm:$0xff] }
  0x2d   : > { %492 = vxpose.xlu1.b32.cont [5/16] (narrow) %v444_v8, 8  ;;  %v624_v2 = vld [vmem:[%s1324_s11 + $0x40] sm:$0xff]  ;;  %v625_v4 = vld [vmem:[%s1324_s11 + $0x48] sm:$0xff]  ;;  %v626_v6 = vld [vmem:[%s1324_s11 + $0x50] sm:$0xff] }
  0x2e   : > { %460 = vxpose.xlu0.b32.cont [5/16] (narrow) %v428_v9, 8  ;;  %v643_v7 = vld [vmem:[%s1324_s11 + $0xd8] sm:$0xff]  ;;  %v644_v9 = vld [vmem:[%s1324_s11 + $0xe0] sm:$0xff]  ;;  %v545_v44 = vld [vmem:[%s1394_s26 + $0xc8] sm:$0xff] }
  0x2f   : > { %v627_v8 = vld [vmem:[%s1324_s11 + $0x58] sm:$0xff]  ;;  %v530_v47 = vld [vmem:[%s1394_s26 + $0x50] sm:$0xff] }
  0x30   : > { %v543_v38 = vld [vmem:[%s1394_s26 + $0xb8] sm:$0xff]  ;;  %v550_v57 = vld [vmem:[%s1394_s26 + $0xf0] sm:$0xff] }
  0x31   : > { %493 = vxpose.xlu1.b32.cont [6/16] (narrow) %v445_v10, 8  ;;  %v628_v10 = vld [vmem:[%s1324_s11 + $0x60] sm:$0xff]  ;;  %v547_v48 = vld [vmem:[%s1394_s26 + $0xd8] sm:$0xff] }
  0x32   : > { %461 = vxpose.xlu0.b32.cont [6/16] (narrow) %v429_v11, 8  ;;  %v645_v11 = vld [vmem:[%s1324_s11 + $0xe8] sm:$0xff]  ;;  %v531_v51 = vld [vmem:[%s1394_s26 + $0x58] sm:$0xff] }
  0x35   : > { %494 = vxpose.xlu1.b32.cont [7/16] (narrow) %v446_v12, 8  ;;  %v629_v12 = vld [vmem:[%s1324_s11 + $0x68] sm:$0xff] }
  0x36   : > { %462 = vxpose.xlu0.b32.cont [7/16] (narrow) %v430_v13, 8  ;;  %v646_v13 = vld [vmem:[%s1324_s11 + $0xf0] sm:$0xff] }
  0x39   : > { %495 = vxpose.xlu1.b32.cont [8/16] (narrow) %v447_v14, 8  ;;  %v630_v14 = vld [vmem:[%s1324_s11 + $0x70] sm:$0xff] }
  0x3a   : > { %463 = vxpose.xlu0.b32.cont [8/16] (narrow) %v431_v15, 8  ;;  %v647_v15 = vld [vmem:[%s1324_s11 + $0xf8] sm:$0xff] }
  0x3d   : > { %496 = vxpose.xlu1.b32.cont [9/16] (narrow) %v448_v16, 8  ;;  %v631_v16 = vld [vmem:[%s1324_s11 + $0x78] sm:$0xff] }
  0x3e   : > { %464 = vxpose.xlu0.b32.cont [9/16] (narrow) %v432_v17, 8  ;;  %v536_v17 = vld [vmem:[%s1394_s26 + $0x80] sm:$0xff] }
  0x41   : > { %497 = vxpose.xlu1.b32.cont [10/16] (narrow) %v449_v18, 8  ;;  %v520_v18 = vld [vmem:[%s1394_s26] sm:$0xff] }
  0x42   : > { %465 = vxpose.xlu0.b32.cont [10/16] (narrow) %v433_v19, 8  ;;  %v537_v19 = vld [vmem:[%s1394_s26 + $0x88] sm:$0xff] }
  0x45   : > { %498 = vxpose.xlu1.b32.cont [11/16] (narrow) %v450_v20, 8  ;;  %v521_v20 = vld [vmem:[%s1394_s26 + $0x8] sm:$0xff] }
  0x46   : > { %466 = vxpose.xlu0.b32.cont [11/16] (narrow) %v434_v21, 8  ;;  %v538_v21 = vld [vmem:[%s1394_s26 + $0x90] sm:$0xff] }
  0x49   : > { %499 = vxpose.xlu1.b32.cont [12/16] (narrow) %v451_v22, 8  ;;  %v522_v22 = vld [vmem:[%s1394_s26 + $0x10] sm:$0xff] }
  0x4a   : > { %467 = vxpose.xlu0.b32.cont [12/16] (narrow) %v435_v23, 8  ;;  %v539_v23 = vld [vmem:[%s1394_s26 + $0x98] sm:$0xff] }
  0x4d   : > { %500 = vxpose.xlu1.b32.cont [13/16] (narrow) %v452_v24, 8  ;;  %v523_v24 = vld [vmem:[%s1394_s26 + $0x18] sm:$0xff] }
  0x4e   : > { %468 = vxpose.xlu0.b32.cont [13/16] (narrow) %v436_v25, 8  ;;  %v540_v25 = vld [vmem:[%s1394_s26 + $0xa0] sm:$0xff] }
  0x51   : > { %501 = vxpose.xlu1.b32.cont [14/16] (narrow) %v453_v26, 8  ;;  %v524_v26 = vld [vmem:[%s1394_s26 + $0x20] sm:$0xff] }
  0x52   : > { %469 = vxpose.xlu0.b32.cont [14/16] (narrow) %v437_v27, 8  ;;  %v1189_v27 = vmov 0.0  }
  0x53   : > { %420 = vst [vmem:[%s1409_s5] sm:$0x3] %v1189_v27  ;;  %421 = vst [vmem:[%s1409_s5 + $0x2] sm:$0x3] %v1189_v27 }
  0x54   : > { %422 = vst [vmem:[%s1409_s5 + $0x4] sm:$0x3] %v1189_v27 }
  0x55   : > { %502 = vxpose.xlu1.b32.cont [15/16] (narrow) %v454_v28, 8  ;;  %v541_v28 = vld [vmem:[%s1394_s26 + $0xa8] sm:$0xff] }
  0x56   : > { %470 = vxpose.xlu0.b32.cont [15/16] (narrow) %v438_v29, 8  ;;  %v525_v29 = vld [vmem:[%s1394_s26 + $0x28] sm:$0xff] }
  0x59   : > { %503 = vxpose.xlu1.b32.end [16/16] (narrow) %v455_v30, 8  ;;  %v716_v30 = vand.u32 127, %v713_v32 }
  0x5a   : > { %471 = vxpose.xlu0.b32.end [16/16] (narrow) %v439_v31, 8  ;;  %v717_v31 = vmul.u32 128, %v1332_v37  ;;  %v544_v37 = vld [vmem:[%s1394_s26 + $0xc0] sm:$0xff] }
  0x5b   : > { %v873_v43 = vld [vmem:[%s1409_s5 + $0x4] sm:$0x3] }
  0x5c   : > { %v718_v35 = vadd.s32 %v717_v31, %v716_v30 }
  0x5d   : > { %680 = vxpose.xlu1.b32.start [1/16] (narrow) %v632_v33, 16  ;;  %v542_v33 = vld [vmem:[%s1394_s26 + $0xb0] sm:$0xff] }
  0x5e   : > { %648 = vxpose.xlu0.b32.start [1/16] (narrow) %v616_v34, 16  ;;  %v526_v34 = vld [vmem:[%s1394_s26 + $0x30] sm:$0xff]  ;;  %vm722_vm4 = vcmp.lt.s32.totalorder %v718_v35, %v721_v36 }
  0x5f   : > { %vm1424_vm6 = vmand %vm723_vm5, %vm722_vm4 }
  0x60   : > { %v885_v42 = vsel %vm1424_vm6, 1.0, %v1189_v27 }
  0x61   : > { %681 = vxpose.xlu1.b32.cont [2/16] (narrow) %v633_v40, 16  ;;  %v527_v40 = vld [vmem:[%s1394_s26 + $0x38] sm:$0xff]  ;;  %v888_v39 = vadd.f32 %v885_v42, %v873_v43 }
  0x62   : > { %649 = vxpose.xlu0.b32.cont [2/16] (narrow) %v617_v41, 16  ;;  %v528_v41 = vld [vmem:[%s1394_s26 + $0x40] sm:$0xff] }
  0x63   : > { %891 = vst [vmem:[%s1409_s5 + $0x4] sm:$0x3] %v888_v39 }
  0x65   : > { %682 = vxpose.xlu1.b32.cont [3/16] (narrow) %v634_v45, 16  ;;  %v529_v45 = vld [vmem:[%s1394_s26 + $0x48] sm:$0xff] }
  0x66   : > { %650 = vxpose.xlu0.b32.cont [3/16] (narrow) %v618_v46, 16  ;;  %v546_v46 = vld [vmem:[%s1394_s26 + $0xd0] sm:$0xff] }
  0x69   : > { %683 = vxpose.xlu1.b32.cont [4/16] (narrow) %v635_v52, 16  ;;  %v548_v52 = vld [vmem:[%s1394_s26 + $0xe0] sm:$0xff] }
  0x6a   : > { %651 = vxpose.xlu0.b32.cont [4/16] (narrow) %v619_v53, 16  ;;  %v532_v53 = vld [vmem:[%s1394_s26 + $0x60] sm:$0xff] }
  0x6d   : > { %684 = vxpose.xlu1.b32.cont [5/16] (narrow) %v636_v55, 16  ;;  %v549_v55 = vld [vmem:[%s1394_s26 + $0xe8] sm:$0xff] }
  0x6e   : > { %652 = vxpose.xlu0.b32.cont [5/16] (narrow) %v620_v56, 16  ;;  %v533_v56 = vld [vmem:[%s1394_s26 + $0x68] sm:$0xff] }
  0x71   : > { %685 = vxpose.xlu1.b32.cont [6/16] (narrow) %v637_v59, 16  ;;  %v534_v59 = vld [vmem:[%s1394_s26 + $0x70] sm:$0xff] }
  0x72   : > { %653 = vxpose.xlu0.b32.cont [6/16] (narrow) %v621_v60, 16 }
  0x75   : > { %686 = vxpose.xlu1.b32.cont [7/16] (narrow) %v638_v61, 16 }
  0x76   : > { %654 = vxpose.xlu0.b32.cont [7/16] (narrow) %v622_v62, 16  ;;  %v551_v62 = vld [vmem:[%s1394_s26 + $0xf8] sm:$0xff] }
  0x79   : > { %687 = vxpose.xlu1.b32.cont [8/16] (narrow) %v639_v63, 16  ;;  %v535_v63 = vld [vmem:[%s1394_s26 + $0x78] sm:$0xff] }
  0x7a   : > { %655 = vxpose.xlu0.b32.cont [8/16] (narrow) %v623_v0, 16 }
  0x7d   : > { %688 = vxpose.xlu1.b32.cont [9/16] (narrow) %v640_v1, 16 }
  0x7e   : > { %656 = vxpose.xlu0.b32.cont [9/16] (narrow) %v624_v2, 16 }
  0x81   : > { %689 = vxpose.xlu1.b32.cont [10/16] (narrow) %v641_v3, 16 }
  0x82   : > { %657 = vxpose.xlu0.b32.cont [10/16] (narrow) %v625_v4, 16 }
  0x85   : > { %690 = vxpose.xlu1.b32.cont [11/16] (narrow) %v642_v5, 16 }
  0x86   : > { %658 = vxpose.xlu0.b32.cont [11/16] (narrow) %v626_v6, 16 }
  0x89   : > { %691 = vxpose.xlu1.b32.cont [12/16] (narrow) %v643_v7, 16 }
  0x8a   : > { %659 = vxpose.xlu0.b32.cont [12/16] (narrow) %v627_v8, 16 }
  0x8d   : > { %692 = vxpose.xlu1.b32.cont [13/16] (narrow) %v644_v9, 16 }
  0x8e   : > { %660 = vxpose.xlu0.b32.cont [13/16] (narrow) %v628_v10, 16 }
  0x91   : > { %693 = vxpose.xlu1.b32.cont [14/16] (narrow) %v645_v11, 16 }
  0x92   : > { %661 = vxpose.xlu0.b32.cont [14/16] (narrow) %v629_v12, 16 }
  0x95   : > { %694 = vxpose.xlu1.b32.cont [15/16] (narrow) %v646_v13, 16 }
  0x96   : > { %662 = vxpose.xlu0.b32.cont [15/16] (narrow) %v630_v14, 16 }
  0x99   : > { %695 = vxpose.xlu1.b32.end [16/16] (narrow) %v647_v15, 16  ;;  %v1446_v60 = vpop.trf.xlu1 }
  0x9a   : > { %663 = vxpose.xlu0.b32.end [16/16] (narrow) %v631_v16, 16  ;;  %v1448_v61 = vpop.trf.xlu0 }
  0x9d   : > { %584 = vxpose.xlu1.b32.start [1/16] (narrow) %v536_v17, 8 }
  0x9e   : > { %552 = vxpose.xlu0.b32.start [1/16] (narrow) %v520_v18, 8 }
  0xa1   : > { %585 = vxpose.xlu1.b32.cont [2/16] (narrow) %v537_v19, 8 }
  0xa2   : > { %553 = vxpose.xlu0.b32.cont [2/16] (narrow) %v521_v20, 8 }
  0xa5   : > { %586 = vxpose.xlu1.b32.cont [3/16] (narrow) %v538_v21, 8 }
  0xa6   : > { %554 = vxpose.xlu0.b32.cont [3/16] (narrow) %v522_v22, 8 }
  0xa9   : > { %587 = vxpose.xlu1.b32.cont [4/16] (narrow) %v539_v23, 8 }
  0xaa   : > { %555 = vxpose.xlu0.b32.cont [4/16] (narrow) %v523_v24, 8 }
  0xad   : > { %588 = vxpose.xlu1.b32.cont [5/16] (narrow) %v540_v25, 8 }
  0xae   : > { %556 = vxpose.xlu0.b32.cont [5/16] (narrow) %v524_v26, 8 }
  0xb1   : > { %589 = vxpose.xlu1.b32.cont [6/16] (narrow) %v541_v28, 8 }
  0xb2   : > { %557 = vxpose.xlu0.b32.cont [6/16] (narrow) %v525_v29, 8 }
  0xb5   : > { %590 = vxpose.xlu1.b32.cont [7/16] (narrow) %v542_v33, 8 }
  0xb6   : > { %558 = vxpose.xlu0.b32.cont [7/16] (narrow) %v526_v34, 8 }
  0xb9   : > { %591 = vxpose.xlu1.b32.cont [8/16] (narrow) %v543_v38, 8 }
  0xba   : > { %559 = vxpose.xlu0.b32.cont [8/16] (narrow) %v527_v40, 8 }
  0xbd   : > { %592 = vxpose.xlu1.b32.cont [9/16] (narrow) %v544_v37, 8 }
  0xbe   : > { %560 = vxpose.xlu0.b32.cont [9/16] (narrow) %v528_v41, 8 }
  0xc1   : > { %593 = vxpose.xlu1.b32.cont [10/16] (narrow) %v545_v44, 8 }
  0xc2   : > { %561 = vxpose.xlu0.b32.cont [10/16] (narrow) %v529_v45, 8 }
  0xc5   : > { %594 = vxpose.xlu1.b32.cont [11/16] (narrow) %v546_v46, 8 }
  0xc6   : > { %562 = vxpose.xlu0.b32.cont [11/16] (narrow) %v530_v47, 8 }
  0xc9   : > { %595 = vxpose.xlu1.b32.cont [12/16] (narrow) %v547_v48, 8 }
  0xca   : > { %563 = vxpose.xlu0.b32.cont [12/16] (narrow) %v531_v51, 8 }
  0xcd   : > { %596 = vxpose.xlu1.b32.cont [13/16] (narrow) %v548_v52, 8 }
  0xce   : > { %564 = vxpose.xlu0.b32.cont [13/16] (narrow) %v532_v53, 8 }
  0xd1   : > { %597 = vxpose.xlu1.b32.cont [14/16] (narrow) %v549_v55, 8 }
  0xd2   : > { %565 = vxpose.xlu0.b32.cont [14/16] (narrow) %v533_v56, 8 }
  0xd5   : > { %598 = vxpose.xlu1.b32.cont [15/16] (narrow) %v550_v57, 8 }
  0xd6   : > { %566 = vxpose.xlu0.b32.cont [15/16] (narrow) %v534_v59, 8 }
  0xd9   : > { %599 = vxpose.xlu1.b32.end [16/16] (narrow) %v551_v62, 8  ;;  %v696_v0 = vpop.trf.xlu1 }
  0xda   : > { %567 = vxpose.xlu0.b32.end [16/16] (narrow) %v535_v63, 8  ;;  %v664_v1 = vpop.trf.xlu0 }
  0xdd   : > { %v697_v2 = vpop.trf.xlu1 }
  0xde   : > { %v665_v3 = vpop.trf.xlu0  ;;  %v761_v4 = vmax.f32 %v696_v0, %v697_v2 }
  0xdf   : > { %v754_v5 = vmax.f32 %v664_v1, %v665_v3 }
  0xe0   : > { %v762_v6 = vrot.slane %v761_v4, 4 }
  0xe1   : > { %v755_v7 = vrot.slane %v754_v5, 4 }
  0xe2   : > { %v763_v8 = vmax.f32 %v761_v4, %v762_v6 }
  0xe3   : > { %v756_v9 = vmax.f32 %v754_v5, %v755_v7 }
  0xe4   : > { %v764_v10 = vrot.slane %v763_v8, 2 }
  0xe5   : > { %v757_v11 = vrot.slane %v756_v9, 2 }
  0xe6   : > { %v765_v12 = vmax.f32 %v763_v8, %v764_v10 }
  0xe7   : > { %v758_v13 = vmax.f32 %v756_v9, %v757_v11 }
  0xe8   : > { %v766_v14 = vrot.slane %v765_v12, 1 }
  0xe9   : > { %v759_v15 = vrot.slane %v758_v13, 1 }
  0xea   : > { %v767_v16 = vmax.f32 %v765_v12, %v766_v14 }
  0xeb   : > { %v760_v17 = vmax.f32 %v758_v13, %v759_v15 }
  0xec   : > { %v770_v18 = vsub.f32 %v696_v0, %v767_v16  ;;  %v771_v19 = vsub.f32 %v697_v2, %v767_v16 }
  0xed   : > { %v768_v20 = vsub.f32 %v664_v1, %v760_v17  ;;  %v769_v21 = vsub.f32 %v665_v3, %v760_v17 }
  0xee   : > { %v776_v22 = vmul.f32 1.442695, %v770_v18  ;;  %v778_v23 = vmul.f32 1.442695, %v771_v19  ;;  %v837_v24 = vsel %vm833_vm0, %v770_v18, 0.0  ;;  %v838_v25 = vsel %vm834_vm1, %v771_v19, 0.0 }
  0xef   : > { %v846_v26 = vadd.f32 %v838_v25, %v837_v24  ;;  %v772_v27 = vmul.f32 1.442695, %v768_v20  ;;  %v774_v28 = vmul.f32 1.442695, %v769_v21  ;;  %v835_v29 = vsel %vm831_vm2, %v768_v20, 0.0 }
  0xf0   : > { %1094 = vpow2.f32 %v776_v22  ;;  %v836_v30 = vsel %vm832_vm3, %v769_v21, 0.0 }
  0xf1   : > { %1096 = vpow2.f32 %v778_v23  ;;  %v839_v31 = vadd.f32 %v836_v30, %v835_v29  ;;  %v847_v39 = vrot.slane %v846_v26, 4 }
  0xf2   : > { %1098 = vpow2.f32 %v772_v27 }
  0xf3   : > { %1100 = vpow2.f32 %v774_v28  ;;  %v840_v45 = vrot.slane %v839_v31, 4  ;;  %v848_v47 = vadd.f32 %v847_v39, %v846_v26 }
  0xf5   : > { %v841_v52 = vadd.f32 %v840_v45, %v839_v31  ;;  %v849_v53 = vrot.slane %v848_v47, 2 }
  0xf7   : > { %v842_v55 = vrot.slane %v841_v52, 2  ;;  %v850_v56 = vadd.f32 %v849_v53, %v848_v47 }
  0xf9   : > { %v843_v57 = vadd.f32 %v842_v55, %v841_v52  ;;  %v851_v59 = vrot.slane %v850_v56, 1  ;;  %v872_v52 = vld [vmem:[%s1409_s5 + $0x2] sm:$0x3] }
  0xfb   : > { %v844_v62 = vrot.slane %v843_v57, 1  ;;  %v852_v5 = vadd.f32 %v851_v59, %v850_v56 }
  0xfd   : > { %v1095_v33 = vpop.eup %1094  ;;  %v845_v13 = vadd.f32 %v844_v62, %v843_v57 }
  0xfe   : > { %v1097_v34 = vpop.eup %1096 }
  0xff   : > { %v1099_v54 = vpop.eup %1098  ;;  %v787_v35 = vadd.f32 %v1097_v34, %v1095_v33 }
 0x100   : > { %v1101_v36 = vpop.eup %1100 }
 0x101   : > { %v788_v38 = vrot.slane %v787_v35, 4  ;;  %v780_v40 = vadd.f32 %v1101_v36, %v1099_v54 }
 0x103   : > { %v789_v37 = vadd.f32 %v788_v38, %v787_v35  ;;  %v781_v41 = vrot.slane %v780_v40, 4 }
 0x105   : > { %v790_v49 = vrot.slane %v789_v37, 2  ;;  %v782_v42 = vadd.f32 %v781_v41, %v780_v40 }
 0x107   : > { %v791_v43 = vadd.f32 %v790_v49, %v789_v37  ;;  %v783_v44 = vrot.slane %v782_v42, 2  ;;  %v871_v37 = vld [vmem:[%s1409_s5] sm:$0x3] }
 0x109   : > { %v792_v50 = vrot.slane %v791_v43, 1  ;;  %v784_v58 = vadd.f32 %v783_v44, %v782_v42 }
 0x10b   : > { %v793_v46 = vadd.f32 %v792_v50, %v791_v43  ;;  %v785_v48 = vrot.slane %v784_v58, 1 }
 0x10d   : > { %1102 = vlog2.f32 %v793_v46  ;;  %v786_v51 = vadd.f32 %v785_v48, %v784_v58 }
 0x10f   : > { %1104 = vlog2.f32 %v786_v51 }
 0x119   : > { %v600_v63 = vpop.trf.xlu1 }
 0x11a   : > { %v568_v0 = vpop.trf.xlu0  ;;  %v1103_v1 = vpop.eup %1102  ;;  %v726_v2 = vsub.f32 %v1446_v60, %v600_v63 }
 0x11b   : > { %v725_v3 = vsub.f32 %v1448_v61, %v568_v0  ;;  %v797_v4 = vmul.f32 0.6931472, %v1103_v1 }
 0x11c   : > { %v1105_v6 = vpop.eup %1104  ;;  %v728_v7 = vand.u32 2147483647, %v726_v2  ;;  %v732_v8 = vmul.f32 0.5, %v726_v2 }
 0x11d   : > { %v727_v9 = vand.u32 2147483647, %v725_v3  ;;  %v731_v10 = vmul.f32 0.5, %v725_v3  ;;  %v854_v11 = vsub.f32 %v852_v5, %v797_v4  ;;  %v795_v12 = vmul.f32 0.6931472, %v1105_v6 }
 0x11e   : > { %vm730_vm8 = vcmp.lt.f32.partialorder %v728_v7, 1.0  ;;  %v734_v14 = vmul.f32 %v732_v8, %v726_v2  ;;  %v1029_v15 = vadd.f32 -0.5, %v728_v7 }
 0x11f   : > { %vm729_vm9 = vcmp.lt.f32.partialorder %v727_v9, 1.0  ;;  %v856_v16 = vmax.f32 %v854_v11, -16.118095  ;;  %v853_v17 = vsub.f32 %v845_v13, %v795_v12  ;;  %v733_v60 = vmul.f32 %v731_v10, %v725_v3 }
 0x120   : > { %v1028_v18 = vadd.f32 -0.5, %v727_v9  ;;  %v738_v61 = vsel %vm730_vm8, %v734_v14, %v1029_v15 }
 0x121   : > { %v858_v19 = vmin.f32 %v856_v16, -1.0000001e-07  ;;  %v855_v20 = vmax.f32 %v853_v17, -16.118095  ;;  %v747_v21 = vsel %vm739_vm7, %v738_v61, 0.0 }
 0x122   : > { %v737_v22 = vsel %vm729_vm9, %v733_v60, %v1028_v18  ;;  %v748_v23 = vrot.slane %v747_v21, 4 }
 0x123   : > { %v740_v24 = vsel %vm739_vm7, %v737_v22, 0.0  ;;  %v861_v25 = vmul.f32 1.442695, %v858_v19  ;;  %v857_v26 = vmin.f32 %v855_v20, -1.0000001e-07  ;;  %v866_v44 = vmul.f32 -0.25, %v858_v19 }
 0x124   : > { %v741_v27 = vrot.slane %v740_v24, 4  ;;  %v749_v28 = vadd.f32 %v748_v23, %v747_v21 }
 0x125   : > { %1106 = vpow2.f32 %v861_v25  ;;  %v859_v29 = vmul.f32 1.442695, %v857_v26  ;;  %v865_v46 = vmul.f32 -0.25, %v857_v26 }
 0x126   : > { %v742_v30 = vadd.f32 %v741_v27, %v740_v24  ;;  %v750_v31 = vrot.slane %v749_v28, 2 }
 0x127   : > { %1108 = vpow2.f32 %v859_v29 }
 0x128   : > { %v743_v33 = vrot.slane %v742_v30, 2  ;;  %v751_v34 = vadd.f32 %v750_v31, %v749_v28 }
 0x12a   : > { %v744_v54 = vadd.f32 %v743_v33, %v742_v30  ;;  %v752_v35 = vrot.slane %v751_v34, 1 }
 0x12c   : > { %v745_v36 = vrot.slane %v744_v54, 1  ;;  %v753_v38 = vadd.f32 %v752_v35, %v751_v34 }
 0x12e   : > { %v746_v40 = vadd.f32 %v745_v36, %v744_v54 }
 0x130   : > { %v877_v41 = vsel %vm876_vm10, %v753_v38, %v746_v40 }
 0x131   : > { %v879_v49 = vsel %vm1424_vm6, %v877_v41, 0.0 }
 0x132   : > { %v886_v42 = vadd.f32 %v879_v49, %v871_v37  ;;  %v1107_v43 = vpop.eup %1106 }
 0x133   : > { %v864_v39 = vsub.f32 1.0, %v1107_v43 }
 0x134   : > { %889 = vst [vmem:[%s1409_s5] sm:$0x3] %v886_v42  ;;  %v1109_v50 = vpop.eup %1108 }
 0x135   : > { %v868_v58 = vmul.f32 %v866_v44, %v864_v39  ;;  %v863_v45 = vsub.f32 1.0, %v1109_v50 }
 0x137   : > { %v870_v47 = vmul.f32 %v868_v58, %v864_v39  ;;  %v867_v48 = vmul.f32 %v865_v46, %v863_v45 }
 0x139   : > { %v869_v51 = vmul.f32 %v867_v48, %v863_v45 }
 0x13b   : > { %v882_v53 = vsel %vm876_vm10, %v870_v47, %v869_v51 }
 0x13c   : > { %v884_v55 = vsel %vm1424_vm6, %v882_v53, 0.0 }
 0x13d   : > { %v887_v56 = vadd.f32 %v884_v55, %v872_v52 }
 0x13f   : > { %890 = vst [vmem:[%s1409_s5 + $0x2] sm:$0x3] %v887_v56 }
 0x140   : > { %1123 = shalt.err (!%p1120_p6)
}
 0x141   : > { %s1124_s24 = scalar_lea.hbm %s1480_s12, 96  ;;  %s1128_s30 = scalar_lea.hbm %s1536_s4, 192 }
 0x142   : > { %p1125_p7 = scmp.ne.s32.totalorder %s1480_s12, %s1124_s24  ;;  %p1129_p11 = scmp.lt.s32.totalorder %s1480_s12, %s1536_s4 }
 0x143   : > { %p1130_p12 = scmp.lt.s32.totalorder %s1128_s30, %s1124_s24 }
 0x144   : > { %p1126_p9 = pnand %p1125_p7, %p1258_p4 }
 0x145   : > { %p1131_p13 = por %p1130_p12, %p1129_p11 }
 0x146   : > { %p1127_p10 = pneg %p1126_p9 }
 0x148   : > { %p1132_p0 = pnand %p1131_p13, %p1127_p10 }
 0x14a   : > { %1135 = shalt.err (!%p1132_p0)
}
 0x14b   : > { %s1191_s7 = smov 32   ;;  %s1192_s8 = smov 2  }
 0x14c   : > { %1035 = dma.vmem_to_hbm [thread:$0]  (%p1258_p4), %s1482_s9, 96, %s1480_s12, %s1487_s18, %s1191_s7, %s1191_s7, %s1192_s8  }
 0x14d PF: > { %p1041_p1 = scmp.ge.s32.totalorder %s1186_s20, 2  ;;  %s921_s10 = sand.u32 1, %s1166_s15  }
 0x14e   : > { %s922_s11 = scalar_lea.sflag [#allocation3], %s921_s10 }
 0x14f   : > { %p1038_p2 = pnand %p1041_p1, %p1265_p8 }
 0x151   : > { %p1039_p3 = pneg %p1038_p2 }
 0x153   : > { %1161 = dma.done.wait (%p1039_p3), %s922_s11, 96  }
 0x154   : > { %1163 = vsyncadd (%p1039_p3), %s922_s11, 4294967200  ;;  %s17_s20 = sadd.s32 1, %s1186_s20   ;;  %s1541_s15 = smov %s1170_s16 }
 0x155   : > { %p14_p5 = scmp.ge.s32.totalorder %s17_s20, 4   ;;  %s1542_s16 = smov %s1174_s17 }
 0x156   : > { %s1543_s17 = smov %s1271_s28  ;;  %s1544_s18 = smov %s1182_s19 }
 0x157   : > { %s1545_s19 = smov %s1547_s23  ;;  %16 = sbr.rel (!%p14_p5) target bundleno = 4 (0x4), region = 84 }
 0x15c   :  { %927 = vsyncpa [#allocation3], 1 }
 0x15d   :  { %929 = vsyncpa [#allocation3 + $0x1], 1 }

// kernel: tpu_custom_call.1
= control target key start
LH: loop header
LB: loop body
LE: loop exit
PB: predicated region body
PF: predicated region fallthrough
CT: control target
= control target key end

     0   :  { %s1415_s0 = inlined_call_operand.hbm [shape: f32[4,4,128], index: 0, kind: input, shape index: {}]   ;;  %s1416_s1 = inlined_call_operand.hbm [shape: f32[4,4,128], index: 1, kind: input, shape index: {}]   ;;  %s1417_s2 = inlined_call_operand.hbm [shape: f32[4,16,128], index: 2, kind: input, shape index: {}]   ;;  %s1418_s3 = inlined_call_operand.vmem [shape: s32[2,2,128], index: 3, kind: input, shape index: {}]   ;;  %s1419_s4 = inlined_call_operand.hbm [shape: f32[6,2,128], index: 4, kind: output, shape index: {}]  }
   0x1   :  { %1427 = sst [smem:[#allocation20_spill]] %s1416_s1 }
   0x2   :  { %9 = vsyncpa [#allocation3], 0 }
   0x3   :  { %11 = vsyncpa [#allocation3 + $0x1], 0 }
   0x4   :  { %12 = vsyncpa [#allocation6], 0 }
   0x5   :  { %14 = vsyncpa [#allocation6 + $0x1], 0 }
   0x6   :  { %15 = vsyncpa [#allocation4], 0 }
   0x7   :  { %17 = vsyncpa [#allocation4 + $0x1], 0  ;;  %s1115_s15 = smov 0   ;;  %s1117_s16 = smov 0  }
   0x8   :  { %s1119_s17 = smov 0   ;;  %s1121_s18 = smov 0  }
   0x9   :  { %s1123_s19 = smov 0   ;;  %s1125_s20 = smov 0  }
   0xa   :  { %s1127_s21 = smov 0   ;;  %s1129_s22 = smov 0  }
   0xb   :  { %s1131_s23 = smov 0  }
   0xc LB: > { %1428 = sst [smem:[#allocation12_spill]] %s1052_s17  ;;  %s1159_s24 = sadd.s32 4294967295, %s1076_s23   ;;  %s1076_s23 = sphi %s1131_s23, %s23_s23   ;;  %s1072_s22 = sphi %s1129_s22, %s1456_s22   ;;  %s1068_s21 = sphi %s1127_s21, %s1455_s21   ;;  %s1064_s20 = sphi %s1125_s20, %s1454_s20   ;;  %s1060_s19 = sphi %s1123_s19, %s1460_s19   ;;  %s1056_s18 = sphi %s1121_s18, %s1459_s18   ;;  %s1052_s17 = sphi %s1119_s17, %s1452_s17   ;;  %s1048_s16 = sphi %s1117_s16, %s1458_s16   ;;  %s1044_s15 = sphi %s1115_s15, %s1457_s15  }
   0xd   : > { %1429 = sst [smem:[#allocation13_spill]] %s1064_s20  ;;  %s731_s25 = sadd.s32 4294967294, %s1076_s23  }
   0xe   : > { %1430 = sst [smem:[#allocation14_spill]] %s1072_s22  ;;  %s35_s26 = sadd.s32 1, %s1072_s22 }
   0xf   : > { %1431 = sst [smem:[#allocation15_spill]] %s1076_s23  ;;  %p40_p0 = scmp.lt.s32.totalorder %s1072_s22, 1 }
  0x10   : > { %p37_p1 = scmp.ge.s32.totalorder %s35_s26, 2  ;;  %s48_s27 = sadd.s32 1, %s1064_s20 }
  0x11   : > { %s1166_s28 = scalar_select %p40_p0, %s1072_s22, 1 }
  0x12   : > { %s1462_s26 = smov (%p37_p1, %s35_s26), 0  ;;  %p55_p2 = scmp.ne.s32.totalorder %s1064_s20, %s1060_s19 }
  0x13   : > { %1432 = sst [smem:[#allocation16_spill]] %s1462_s26  ;;  %p56_p3 = scmp.eq.s32.totalorder %s1076_s23, 0 }
  0x14   : > { %p43_p4 = scmp.lt.s32.totalorder %s1462_s26, 1  ;;  %p61_p5 = scmp.ne.s32.totalorder %s1060_s19, %s1056_s18 }
  0x15   : > { %p1175_p6 = por %p56_p3, %p55_p2  ;;  %p62_p7 = scmp.eq.s32.totalorder %s1159_s24, 0 }
  0x16   : > { %s44_s30 = scalar_select %p43_p4, %s1462_s26, 1 }
  0x17   : > { %p1181_p8 = por %p62_p7, %p61_p5  ;;  %s167_s6 = ssub.s32 %s1072_s22, %s1462_s26 }
  0x18   : > { %s45_s7 = ssub.s32 %s1166_s28, %s44_s30  ;;  %p168_p9 = scmp.eq.s32.totalorder %s167_s6, 0 }
  0x19   : > { %p46_p10 = scmp.eq.s32.totalorder %s45_s7, 0  ;;  %s170_s8 = sadd.s32 1, %s1052_s17 }
  0x1a   : > { %s1190_s9 = scalar_select %p168_p9, %s1052_s17, %s170_s8  }
  0x1b   : > { %s1193_s10 = scalar_select %p46_p10, %s1064_s20, %s48_s27  }
  0x1c   : > { %1435 = sst [smem:[#allocation17_spill]] %s1190_s9  ;;  %p180_p11 = scmp.ne.s32.totalorder %s1052_s17, %s1048_s16 }
  0x1d   : > { %1436 = sst [smem:[#allocation18_spill]] %s1193_s10  ;;  %p181_p12 = scmp.eq.s32.totalorder %s1159_s24, 1 }
  0x1e   : > { %p186_p13 = scmp.ne.s32.totalorder %s1048_s16, %s1044_s15  ;;  %p187_p0 = scmp.eq.s32.totalorder %s731_s25, 1 }
  0x1f   : > { %p1200_p1 = por %p181_p12, %p180_p11  ;;  %p733_p2 = scmp.ge.s32.totalorder %s1076_s23, 2 }
  0x20   : > { %p1205_p3 = por %p187_p0, %p186_p13  ;;  %p786_p4 = scmp.lt.s32.totalorder %s1076_s23, 2 }
  0x21   : > { %s1211_s13 = sand.u32 1, %s1064_s20   ;;  %s758_s14 = sshll.u32 %s1166_s28, 7 }
  0x22   : > { %s1438_s12 = scalar_select %p1205_p3, 1, 0 }
  0x23   : > { %s734_s18 = sshll.u32 %s1211_s13, 3  ;;  %p1217_p5 = pnand %p786_p4, %p1175_p6 }
  0x24   : > { %1439 = sst [smem:[#allocation19_spill]] %s1438_s12  ;;  %s231_s25 = sand.u32 1, %s1076_s23  }
  0x25   : > { %s1441_s1 = sld [smem:[#allocation20_spill]]  ;;  %s235_s8 = scalar_lea.vmem [#allocation5], %s734_s18 }
  0x26   : > { %s245_s26 = sshll.u32 %s235_s8, 4  ;;  %p744_p7 = scmp.ge.s32.totalorder %s1076_s23, 1  ;;  %s246_s26 = int_to_ptr.vmem [resolvable:$true] %s245_s26 }
  0x27   : > { %s1230_s22 = scalar_lea.sflag [#allocation6], %s231_s25  ;;  %p886_p6 = pneg %p1217_p5 }
  0x28   : > { %s897_s29 = scalar_lea.vmem %s246_s26, 128  ;;  %s1078_s10 = smov [#allocation5]  }
  0x29   : > { %p898_p9 = scmp.ne.s32.totalorder %s246_s26, %s897_s29  ;;  %s902_s20 = sshll.u32 %s1078_s10, 4  ;;  %s903_s20 = int_to_ptr.vmem [resolvable:$false] %s902_s20 }
  0x2a   : > { %s904_s30 = scalar_lea.vmem %s903_s20, 256  ;;  %p905_p12 = scmp.lt.s32.totalorder %s246_s26, %s903_s20 }
  0x2b   : > { %s244_s7 = scalar_lea.hbm %s1441_s1, %s758_s14  ;;  %p900_p10 = pnand %p898_p9, %p886_p6 }
  0x2c   : > { %p906_p13 = scmp.lt.s32.totalorder %s904_s30, %s897_s29 }
  0x2d   : > { %p901_p11 = pneg %p900_p10 }
  0x2e   : > { %p907_p0 = por %p906_p13, %p905_p12 }
  0x30   : > { %p908_p4 = pnand %p907_p0, %p901_p11 }
  0x32   : > { %911 = shalt.err (!%p908_p4)
}
  0x33   : > { %s1079_s6 = smov 64   ;;  %s1080_s25 = smov 4  }
  0x34   : > { %778 = dma.hbm_to_vmem [thread:$0]  (!%p1217_p5), %s244_s7, 128, %s246_s26, %s1230_s22, %s1079_s6, %s1079_s6, %s1080_s25  }
  0x35   : > { %p291_p9 = scmp.lt.s32.totalorder %s1076_s23, 3  ;;  %s220_s29 = scalar_lea.hbm %s1415_s0, %s758_s14 }
  0x36   : > { %s211_s30 = scalar_lea.vmem [#allocation2], %s734_s18  ;;  %s740_s9 = sshll.u32 %s1211_s13, 5 }
  0x37   : > { %p1243_p10 = pnand %p744_p7, %p291_p9  ;;  %s221_s1 = sshll.u32 %s211_s30, 4  ;;  %s222_s1 = int_to_ptr.vmem [resolvable:$true] %s221_s1 }
  0x38   : > { %s208_s17 = scalar_lea.sflag [#allocation3], %s1211_s13  ;;  %s925_s12 = scalar_lea.vmem %s222_s1, 128 }
  0x39   : > { %p926_p11 = scmp.ne.s32.totalorder %s222_s1, %s925_s12  ;;  %s1081_s26 = smov [#allocation2]  }
  0x3a   : > { %s930_s7 = sshll.u32 %s1081_s26, 4  ;;  %s931_s7 = int_to_ptr.vmem [resolvable:$false] %s930_s7 }
  0x3b   : > { %p928_p12 = pnand %p926_p11, %p886_p6  ;;  %s932_s23 = scalar_lea.vmem %s931_s7, 256 }
  0x3c   : > { %p933_p13 = scmp.lt.s32.totalorder %s222_s1, %s931_s7  ;;  %p934_p0 = scmp.lt.s32.totalorder %s932_s23, %s925_s12 }
  0x3d   : > { %p929_p7 = pneg %p928_p12 }
  0x3e   : > { %p935_p4 = por %p934_p0, %p933_p13 }
  0x40   : > { %p936_p9 = pnand %p935_p4, %p929_p7 }
  0x42   : > { %939 = shalt.err (!%p936_p9)
}
  0x43   : > { %775 = dma.hbm_to_vmem [thread:$0]  (!%p1217_p5), %s220_s29, 128, %s222_s1, %s208_s17, %s1079_s6, %s1079_s6, %s1080_s25  }
  0x44   : > { %s761_s13 = sshll.u32 %s1166_s28, 9  ;;  %s259_s8 = scalar_lea.vmem [#allocation7], %s740_s9 }
  0x45   : > { %s269_s10 = scalar_lea.hbm %s1417_s2, %s761_s13  ;;  %s270_s30 = sshll.u32 %s259_s8, 4  ;;  %s271_s30 = int_to_ptr.vmem [resolvable:$true] %s270_s30 }
  0x46   : > { %s953_s26 = scalar_lea.vmem %s271_s30, 512  ;;  %s1082_s23 = smov [#allocation7]  }
  0x47   : > { %p954_p11 = scmp.ne.s32.totalorder %s271_s30, %s953_s26  ;;  %s958_s12 = sshll.u32 %s1082_s23, 4  ;;  %s959_s12 = int_to_ptr.vmem [resolvable:$false] %s958_s12 }
  0x48   : > { %s960_s7 = scalar_lea.vmem %s959_s12, 1024  ;;  %p961_p13 = scmp.lt.s32.totalorder %s271_s30, %s959_s12 }
  0x49   : > { %p956_p12 = pnand %p954_p11, %p886_p6  ;;  %p962_p0 = scmp.lt.s32.totalorder %s960_s7, %s953_s26 }
  0x4b   : > { %p957_p7 = pneg %p956_p12  ;;  %p963_p4 = por %p962_p0, %p961_p13 }
  0x4d   : > { %p964_p9 = pnand %p963_p4, %p957_p7 }
  0x4f   : > { %967 = shalt.err (!%p964_p9)
}
  0x50   : > { %s1083_s1 = smov 128   ;;  %s1084_s17 = smov 8  }
  0x51   : > { %781 = dma.hbm_to_vmem [thread:$0]  (!%p1217_p5), %s269_s10, 512, %s271_s30, %s1230_s22, %s1083_s1, %s1083_s1, %s1084_s17  }
  0x52   : > { %295 = sbr.rel (%p1243_p10) target bundleno = 206 (0xce), region = 36  ;;  %s1274_s28 = sand.u32 (!%p1243_p10), 1, %s1060_s19  }
  0x53   : > { %s745_s9 = sshll.u32 (!%p1243_p10), %s1274_s28, 3  ;;  %s298_s6 = scalar_lea.sflag (!%p1243_p10), [#allocation3], %s1274_s28 }
  0x54   : > { %s1278_s25 = scalar_lea.vmem (!%p1243_p10), [#allocation2], %s745_s9 }
  0x57   : > { %1031 = dma.done.wait (%p1181_p8), %s298_s6, 128  }
  0x58   : > { %1033 = vsyncadd (%p1181_p8), %s298_s6, 4294967168  ;;  %s306_s22 = sand.u32 1, %s1159_s24   ;;  %s1285_s20 = scalar_lea.vmem [#allocation5], %s745_s9 }
  0x59   : > { %s307_s27 = scalar_lea.sflag [#allocation6], %s306_s22 }
  0x5a   : > { %1035 = dma.done.wait (%p1181_p8), %s307_s27, 640  }
  0x5b   : > { %1037 = vsyncadd (%p1181_p8), %s307_s27, 4294966656  ;;  %s747_s29 = sshll.u32 %s1274_s28, 5  ;;  %s358_s13 = sand.u32 1, %s1048_s16   ;;  %v401_v0 = vlaneseq  ;;  %v1085_v3 = vmov 0.0   ;;  %v392_v12 = vld [vmem:[%s1278_s25] sm:$0xf] }
  0x5c   : > { %s763_s14 = smul.u32 6, %s358_s13  ;;  %p374_p5 = scmp.lt.s32.totalorder %s1068_s21, 1  ;;  %v393_v13 = vld [vmem:[%s1278_s25 + $0x4] sm:$0xf]  ;;  %v394_v15 = vld [vmem:[%s1285_s20] sm:$0xf] }
  0x5d   : > { %v1296_v1 = vshrl.u32 %v401_v0, 7  ;;  %v404_v2 = vand.u32 127, %v401_v0  ;;  %s752_s24 = sshll.u32 %s1068_s21, 8  ;;  %s319_s8 = scalar_lea.vmem [#allocation7], %s747_s29  ;;  %v395_v16 = vld [vmem:[%s1285_s20 + $0x4] sm:$0xf]  ;;  %v413_v21 = vsub.f32 %v392_v12, %v394_v15 }
  0x5e   : > { %s408_s18 = ssub.s32 300, %s752_s24  ;;  %s1300_s5 = scalar_lea.vmem [#allocation8], %s763_s14  ;;  %v396_v7 = vld [vmem:[%s319_s8] sm:$0xff]  ;;  %v397_v8 = vld [vmem:[%s319_s8 + $0x8] sm:$0xff]  ;;  %v398_v9 = vld [vmem:[%s319_s8 + $0x10] sm:$0xff]  ;;  %v414_v22 = vsub.f32 %v393_v13, %v395_v16  ;;  %vm427_vm3 = vcmask 1043456  }
  0x5f   : > { %s375_s10 = scalar_select %p374_p5, %s1068_s21, 1  ;;  %388 = vst [vmem:[%s1300_s5] sm:$0x3] %v1085_v3  ;;  %v405_v4 = vmul.u32 128, %v1296_v1  ;;  %389 = vst [vmem:[%s1300_s5 + $0x2] sm:$0x3] %v1085_v3  ;;  %v409_v6 = vstv %s408_s18  ;;  %v399_v10 = vld [vmem:[%s319_s8 + $0x18] sm:$0xff]  ;;  %v442_v11 = vmax.f32 %v396_v7, %v397_v8 }
  0x60   : > { %390 = vst [vmem:[%s1300_s5 + $0x4] sm:$0x3] %v1085_v3  ;;  %v449_v14 = vmax.f32 %v398_v9, %v399_v10  ;;  %v1086_v19 = vmov 1966171168   ;;  %v415_v26 = vand.u32 2147483647, %v413_v21 }
  0x61   : > { %s1464_s10 = smov (!%p374_p5, %s375_s10), 1  ;;  %v406_v5 = vadd.s32 %v405_v4, %v404_v2  ;;  %v443_v18 = vrot.slane %v442_v11, 4  ;;  %v490_v20 = vunpack.c.l.s4 %v1086_v19  ;;  %v416_v27 = vand.u32 2147483647, %v414_v22  ;;  %s762_s7 = smul.u32 96, %s1068_s21 }
  0x62   : > { %s751_s30 = sshll.u32 %s1464_s10, 1  ;;  %v450_v23 = vrot.slane %v449_v14, 4  ;;  %v419_v28 = vmul.f32 0.5, %v413_v21  ;;  %v420_v33 = vmul.f32 0.5, %v414_v22  ;;  %vm1319_vm4 = vcmp.lt.f32.partialorder %v415_v26, 1.0  ;;  %s594_s1 = sshll.u32 %s1300_s5, 4  ;;  %s1355_s1 = int_to_ptr.vmem [resolvable:$true] %s594_s1 }
  0x63   : > { %s379_s12 = scalar_lea.vmem %s1418_s3, %s751_s30  ;;  %vm410_vm0 = vcmp.lt.s32.totalorder %v406_v5, %v409_v6  ;;  %v444_v25 = vmax.f32 %v442_v11, %v443_v18  ;;  %v491_v31 = vunpack.c.0.s8 %v490_v20  ;;  %vm1323_vm5 = vcmp.lt.f32.partialorder %v416_v27, 1.0  ;;  %s1353_s9 = scalar_lea.hbm %s1419_s4, %s762_s7 }
  0x64   : > { %v400_v17 = vld [vmem:[%s379_s12] sm:$0x3]  ;;  %v451_v29 = vmax.f32 %v449_v14, %v450_v23  ;;  %v421_v37 = vmul.f32 %v419_v28, %v413_v21  ;;  %v422_v40 = vmul.f32 %v420_v33, %v414_v22  ;;  %v753_v41 = vadd.f32 -0.5, %v415_v26  ;;  %s1360_s21 = scalar_lea.sflag [#allocation4], %s358_s13  ;;  %s968_s6 = scalar_lea.vmem %s1355_s1, 96 }
  0x65   : > { %vm411_vm1 = vcmp.gt.s32.totalorder %v400_v17, 0  ;;  %v445_v30 = vrot.slane %v444_v25, 2  ;;  %v754_v42 = vadd.f32 -0.5, %v416_v27  ;;  %v494_v49 = vsub.s32 %v491_v31, %v1296_v1  ;;  %p969_p8 = scmp.ne.s32.totalorder %s1355_s1, %s968_s6  ;;  %s1087_s25 = smov [#allocation8]  }
  0x66   : > { %vm1313_vm2 = vmand %vm411_vm1, %vm410_vm0  ;;  %v452_v34 = vrot.slane %v451_v29, 2  ;;  %v425_v45 = vsel %vm1319_vm4, %v421_v37, %v753_v41  ;;  %v486_v11 = vadd.s32 8, %v1296_v1  ;;  %vm564_vm6 = vcmask 1041409   ;;  %v559_v20 = vld [vmem:[%s1300_s5] sm:$0x3]  ;;  %s972_s22 = sshll.u32 %s1087_s25, 4  ;;  %s973_s22 = int_to_ptr.vmem [resolvable:$false] %s972_s22 }
  0x67   : > { %v573_v32 = vsel %vm1313_vm2, 1.0, %v1085_v3  ;;  %v561_v38 = vld [vmem:[%s1300_s5 + $0x4] sm:$0x3]  ;;  %v446_v39 = vmax.f32 %v444_v25, %v445_v30  ;;  %v426_v46 = vsel %vm1323_vm5, %v422_v40, %v754_v42  ;;  %v428_v50 = vsel %vm427_vm3, %v425_v45, 0.0  ;;  %p970_p6 = pnand %p969_p8, %p1200_p1  ;;  %s974_s27 = scalar_lea.vmem %s973_s22, 192 }
  0x68   : > { %v453_v43 = vmax.f32 %v451_v29, %v452_v34  ;;  %v576_v47 = vadd.f32 %v573_v32, %v561_v38  ;;  %v429_v52 = vrot.slane %v428_v50, 4  ;;  %v435_v53 = vsel %vm427_vm3, %v426_v46, 0.0  ;;  %p975_p11 = scmp.lt.s32.totalorder %s1355_s1, %s973_s22  ;;  %p976_p12 = scmp.lt.s32.totalorder %s974_s27, %s968_s6 }
  0x69   : > { %v447_v44 = vrot.slane %v446_v39, 1  ;;  %v436_v55 = vrot.slane %v435_v53, 4  ;;  %v495_v61 = vrot.slane %v400_v17, %v494_v49  ;;  %v487_v16 = vadd.s32 1, %v1296_v1  ;;  %p971_p10 = pneg %p970_p6 }
  0x6a   : > { %v454_v48 = vrot.slane %v453_v43, 1  ;;  %579 = vst [vmem:[%s1300_s5 + $0x4] sm:$0x3] %v576_v47  ;;  %v430_v58 = vadd.f32 %v429_v52, %v428_v50  ;;  %v488_v17 = vadd.s32 1, %v486_v11  ;;  %p977_p7 = por %p976_p12, %p975_p11 }
  0x6b   : > { %v448_v51 = vmax.f32 %v446_v39, %v447_v44  ;;  %v437_v62 = vadd.f32 %v436_v55, %v435_v53  ;;  %v496_v5 = vcombine.high %v495_v61, %v495_v61 }
  0x6c   : > { %v455_v54 = vmax.f32 %v453_v43, %v454_v48  ;;  %v431_v4 = vrot.slane %v430_v58, 2  ;;  %p978_p13 = pnand %p977_p7, %p971_p10 }
  0x6d   : > { %v456_v56 = vsub.f32 %v396_v7, %v448_v51  ;;  %v457_v57 = vsub.f32 %v397_v8, %v448_v51  ;;  %v438_v6 = vrot.slane %v437_v62, 2  ;;  %v503_v8 = vrot.slane %v495_v61, %v494_v49 }
  0x6e   : > { %v458_v59 = vsub.f32 %v398_v9, %v455_v54  ;;  %v459_v60 = vsub.f32 %v399_v10, %v455_v54  ;;  %v432_v7 = vadd.f32 %v431_v4, %v430_v58  ;;  %v513_v9 = vsub.s32 0, %v1296_v1 }
  0x6f   : > { %v460_v63 = vmul.f32 1.442695, %v456_v56  ;;  %v462_v0 = vmul.f32 1.442695, %v457_v57  ;;  %v439_v10 = vadd.f32 %v438_v6, %v437_v62  ;;  %v510_v13 = vrot.slane %v496_v5, %v494_v49 }
  0x70   : > { %v464_v2 = vmul.f32 1.442695, %v458_v59  ;;  %v466_v3 = vmul.f32 1.442695, %v459_v60  ;;  %v433_v12 = vrot.slane %v432_v7, 1  ;;  %v514_v18 = vrot.slane %v503_v8, %v513_v9 }
  0x71   : > { %868 = vpow2.f32 %v460_v63  ;;  %v440_v14 = vrot.slane %v439_v10, 1  ;;  %v518_v21 = vrot.slane %v510_v13, %v513_v9 }
  0x72   : > { %870 = vpow2.f32 %v462_v0  ;;  %v434_v15 = vadd.f32 %v433_v12, %v432_v7  ;;  %vm519_vm7 = vcmp.eq.s32.totalorder %v487_v16, %v514_v18  ;;  %vm520_vm8 = vcmp.eq.s32.totalorder %v488_v17, %v514_v18 }
  0x73   : > { %872 = vpow2.f32 %v464_v2  ;;  %v441_v19 = vadd.f32 %v440_v14, %v439_v10  ;;  %vm521_vm9 = vcmp.eq.s32.totalorder %v487_v16, %v518_v21  ;;  %vm522_vm10 = vcmp.eq.s32.totalorder %v488_v17, %v518_v21 }
  0x74   : > { %874 = vpow2.f32 %v466_v3  ;;  %v523_v28 = vsel %vm519_vm7, %v456_v56, 0.0  ;;  %v524_v1 = vsel %vm520_vm8, %v457_v57, 0.0  ;;  %v525_v32 = vsel %vm521_vm9, %v458_v59, 0.0 }
  0x75   : > { %v565_v22 = vsel %vm564_vm6, %v441_v19, %v434_v15  ;;  %v526_v33 = vsel %vm522_vm10, %v459_v60, 0.0  ;;  %v527_v34 = vadd.f32 %v524_v1, %v523_v28 }
  0x76   : > { %v567_v23 = vsel %vm1313_vm2, %v565_v22, 0.0  ;;  %v534_v37 = vadd.f32 %v526_v33, %v525_v32 }
  0x77   : > { %v574_v25 = vadd.f32 %v567_v23, %v559_v20  ;;  %v528_v40 = vrot.slane %v527_v34, 4  ;;  %v560_v20 = vld [vmem:[%s1300_s5 + $0x2] sm:$0x3] }
  0x78   : > { %v535_v43 = vrot.slane %v534_v37, 4 }
  0x79   : > { %577 = vst [vmem:[%s1300_s5] sm:$0x3] %v574_v25  ;;  %v529_v46 = vadd.f32 %v528_v40, %v527_v34 }
  0x7a   : > { %v536_v49 = vadd.f32 %v535_v43, %v534_v37 }
  0x7b   : > { %v530_v52 = vrot.slane %v529_v46, 2 }
  0x7c   : > { %v537_v54 = vrot.slane %v536_v49, 2 }
  0x7d   : > { %v531_v55 = vadd.f32 %v530_v52, %v529_v46 }
  0x7e   : > { %v869_v26 = vpop.eup %868  ;;  %v538_v56 = vadd.f32 %v537_v54, %v536_v49 }
  0x7f   : > { %v871_v27 = vpop.eup %870  ;;  %v532_v57 = vrot.slane %v531_v55, 1 }
  0x80   : > { %v873_v29 = vpop.eup %872  ;;  %v468_v30 = vadd.f32 %v871_v27, %v869_v26  ;;  %v539_v58 = vrot.slane %v538_v56, 1 }
  0x81   : > { %v875_v31 = vpop.eup %874  ;;  %v533_v59 = vadd.f32 %v532_v57, %v531_v55 }
  0x82   : > { %v469_v35 = vrot.slane %v468_v30, 4  ;;  %v475_v36 = vadd.f32 %v875_v31, %v873_v29  ;;  %v540_v62 = vadd.f32 %v539_v58, %v538_v56 }
  0x84   : > { %v470_v38 = vadd.f32 %v469_v35, %v468_v30  ;;  %v476_v39 = vrot.slane %v475_v36, 4 }
  0x86   : > { %v471_v41 = vrot.slane %v470_v38, 2  ;;  %v477_v42 = vadd.f32 %v476_v39, %v475_v36 }
  0x88   : > { %v472_v44 = vadd.f32 %v471_v41, %v470_v38  ;;  %v478_v45 = vrot.slane %v477_v42, 2 }
  0x8a   : > { %v473_v47 = vrot.slane %v472_v44, 1  ;;  %v479_v48 = vadd.f32 %v478_v45, %v477_v42 }
  0x8c   : > { %v474_v50 = vadd.f32 %v473_v47, %v472_v44  ;;  %v480_v51 = vrot.slane %v479_v48, 1 }
  0x8e   : > { %v481_v53 = vadd.f32 %v480_v51, %v479_v48  ;;  %876 = vlog2.f32 %v474_v50 }
  0x90   : > { %878 = vlog2.f32 %v481_v53 }
  0x9b   : > { %v877_v60 = vpop.eup %876 }
  0x9c   : > { %v483_v61 = vmul.f32 0.6931472, %v877_v60 }
  0x9d   : > { %v879_v63 = vpop.eup %878 }
  0x9e   : > { %v485_v0 = vmul.f32 0.6931472, %v879_v63  ;;  %v541_v2 = vsub.f32 %v533_v59, %v483_v61 }
  0xa0   : > { %v542_v3 = vsub.f32 %v540_v62, %v485_v0  ;;  %v543_v4 = vmax.f32 %v541_v2, -16.118095 }
  0xa2   : > { %v544_v5 = vmax.f32 %v542_v3, -16.118095  ;;  %v545_v6 = vmin.f32 %v543_v4, -1.0000001e-07 }
  0xa4   : > { %v546_v11 = vmin.f32 %v544_v5, -1.0000001e-07  ;;  %v547_v7 = vmul.f32 1.442695, %v545_v6  ;;  %v553_v9 = vmul.f32 -0.25, %v545_v6 }
  0xa6   : > { %880 = vpow2.f32 %v547_v7  ;;  %v549_v8 = vmul.f32 1.442695, %v546_v11  ;;  %v554_v13 = vmul.f32 -0.25, %v546_v11 }
  0xa8   : > { %882 = vpow2.f32 %v549_v8 }
  0xb3   : > { %v881_v10 = vpop.eup %880 }
  0xb4   : > { %v551_v12 = vsub.f32 1.0, %v881_v10 }
  0xb5   : > { %v883_v14 = vpop.eup %882 }
  0xb6   : > { %v552_v15 = vsub.f32 1.0, %v883_v14  ;;  %v555_v16 = vmul.f32 %v553_v9, %v551_v12 }
  0xb8   : > { %v556_v17 = vmul.f32 %v554_v13, %v552_v15  ;;  %v557_v18 = vmul.f32 %v555_v16, %v551_v12 }
  0xba   : > { %v558_v19 = vmul.f32 %v556_v17, %v552_v15 }
  0xbc   : > { %v570_v21 = vsel %vm564_vm6, %v558_v19, %v557_v18 }
  0xbd   : > { %v572_v22 = vsel %vm1313_vm2, %v570_v21, 0.0 }
  0xbe   : > { %v575_v23 = vadd.f32 %v572_v22, %v560_v20 }
  0xc0   : > { %578 = vst [vmem:[%s1300_s5 + $0x2] sm:$0x3] %v575_v23 }
  0xc1   : > { %981 = shalt.err (!%p978_p13)
}
  0xc2   : > { %s982_s20 = scalar_lea.hbm %s1353_s9, 96  ;;  %s986_s14 = scalar_lea.hbm %s1419_s4, 192 }
  0xc3   : > { %p983_p0 = scmp.ne.s32.totalorder %s1353_s9, %s982_s20  ;;  %p987_p5 = scmp.lt.s32.totalorder %s1353_s9, %s1419_s4 }
  0xc4   : > { %p988_p8 = scmp.lt.s32.totalorder %s986_s14, %s982_s20 }
  0xc5   : > { %p984_p4 = pnand %p983_p0, %p1200_p1 }
  0xc6   : > { %p989_p6 = por %p988_p8, %p987_p5 }
  0xc7   : > { %p985_p9 = pneg %p984_p4 }
  0xc9   : > { %p990_p10 = pnand %p989_p6, %p985_p9 }
  0xcb   : > { %993 = shalt.err (!%p990_p10)
}
  0xcc   : > { %s1088_s10 = smov 32   ;;  %s1089_s5 = smov 2  }
  0xcd   : > { %770 = dma.vmem_to_hbm [thread:$0]  (%p1200_p1), %s1355_s1, 96, %s1353_s9, %s1360_s21, %s1088_s10, %s1088_s10, %s1089_s5  }
  0xce PF: > { %s1450_s30 = sld [smem:[#allocation15_spill]]  ;;  %s609_s26 = sand.u32 1, %s1044_s15  }
  0xcf   : > { %p783_p11 = pnand %p733_p2, %p1205_p3  ;;  %s610_s23 = scalar_lea.sflag [#allocation4], %s609_s26 }
  0xd1   : > { %p784_p12 = pneg %p783_p11 }
  0xd3   : > { %1039 = dma.done.wait (%p784_p12), %s610_s23, 96  }
  0xd4   : > { %1041 = vsyncadd (%p784_p12), %s610_s23, 4294967200  ;;  %s23_s23 = sadd.s32 1, %s1450_s30   ;;  %s1451_s12 = sld [smem:[#allocation12_spill]] }
  0xd5   : > { %p20_p7 = scmp.ge.s32.totalorder %s23_s23, 4   ;;  %s1452_s17 = sld [smem:[#allocation17_spill]] }
  0xd6   : > { %s1453_s11 = sld [smem:[#allocation13_spill]]  ;;  %s1457_s15 = smov %s1048_s16 }
  0xd7   : > { %s1454_s20 = sld [smem:[#allocation18_spill]]  ;;  %s1459_s18 = smov %s1060_s19 }
  0xd8   : > { %s1455_s21 = sld [smem:[#allocation14_spill]]  ;;  %22 = sbr.rel (!%p20_p7) target bundleno = 12 (0xc), region = 112 }
  0xd9   : > { %s1456_s22 = sld [smem:[#allocation16_spill]] }
  0xda   : > { %s1458_s16 = smov %s1451_s12 }
  0xdc   : > { %s1460_s19 = smov %s1453_s11 }
  0xdd   :  { %615 = vsyncpa [#allocation3], 1 }
  0xde   :  { %617 = vsyncpa [#allocation3 + $0x1], 1 }
  0xdf   :  { %618 = vsyncpa [#allocation6], 1 }
  0xe0   :  { %620 = vsyncpa [#allocation6 + $0x1], 1 }
  0xe1   :  { %621 = vsyncpa [#allocation4], 1 }
  0xe2   :  { %623 = vsyncpa [#allocation4 + $0x1], 1 }

</bundles_post_ra>
